<compile_context>
chip_gen: v6e
topology: v6e:2x2x1
jax: 0.10.0
libtpu: 0.0.40
codegen_flags: <defaults>
</compile_context>

<pallas_src>
import functools

import numpy as np
import jax
import jax.numpy as jnp
from jax.experimental import pallas as pl
from jax.experimental.pallas import tpu as pltpu

ALPHA = 0.25
GAMMA = 2.0
CENTER_RADIUS = 2.5
EXPANDED_STRIDES = 32.0
_EPS = 1e-9


def _round_up(x, m):
    return ((x + m - 1) // m) * m


# ---------------------------------------------------------------------------
# Pallas kernel: per (batch, Q-tile) cost matrix + pairwise IoU
# ---------------------------------------------------------------------------
def _matcher_cost_kernel(logits_ref, boxes_ref, gt_t_ref, labels_ref,
                         cost_ref, iou_ref, *, use_bf16_focal):
    focal_dtype = jnp.bfloat16 if use_bf16_focal else jnp.float32

    x = logits_ref[0]                # [tq, Cp] f32 logits
    boxes = boxes_ref[0]             # [tq, 4]  f32, cxcywh
    gt_t = gt_t_ref[0]               # [4, Gp]  f32, cxcywh coordinate-major
    labels = labels_ref[0]           # [1, Gp]  int32, -1 = padded gt

    Cp = x.shape[1]
    Gp = labels.shape[1]

    # ---- focal classification cost (shared-softplus form: no divide, no clamps)
    t = jnp.log(1.0 + jnp.exp(-jnp.abs(x)))          # softplus(-|x|), exact f32
    sp_neg = jnp.maximum(-x, 0.0) + t                # -log(sigmoid(x))
    sp_pos = jnp.maximum(x, 0.0) + t                 # -log(1 - sigmoid(x))
    p = jnp.exp(-sp_neg)                             # sigmoid(x), exact f32
    pf = p.astype(focal_dtype)
    qf = (1.0 - p).astype(focal_dtype)
    pos = (ALPHA * (qf * qf)) * sp_neg.astype(focal_dtype)
    neg = ((1.0 - ALPHA) * (pf * pf)) * sp_pos.astype(focal_dtype)
    focal = (pos - neg).astype(jnp.bfloat16)         # [tq, Cp]

    # one-hot class matrix built in-kernel; class gather = bf16 MXU matmul
    class_iota = jax.lax.broadcasted_iota(jnp.int32, (Cp, Gp), 0)
    onehot = (class_iota == labels).astype(jnp.bfloat16)        # [Cp, Gp] exact
    cost_class = jnp.dot(focal, onehot,
                         preferred_element_type=jnp.float32)    # [tq, Gp]

    valid = labels >= 0                                          # [1, Gp] bool

    # ---- cxcywh -> xyxy ----
    q_cx, q_cy = boxes[:, 0:1], boxes[:, 1:2]                    # [tq, 1]
    q_w, q_h = boxes[:, 2:3], boxes[:, 3:4]
    q_x1, q_y1 = q_cx - 0.5 * q_w, q_cy - 0.5 * q_h
    q_x2, q_y2 = q_cx + 0.5 * q_w, q_cy + 0.5 * q_h
    g_cx, g_cy = gt_t[0:1, :], gt_t[1:2, :]                      # [1, Gp]
    g_w, g_h = gt_t[2:3, :], gt_t[3:4, :]
    g_x1, g_y1 = g_cx - 0.5 * g_w, g_cy - 0.5 * g_h
    g_x2, g_y2 = g_cx + 0.5 * g_w, g_cy + 0.5 * g_h

    # ---- pairwise IoU: EUP approx reciprocal + one Newton-Raphson refinement ----
    iw = jnp.maximum(jnp.minimum(q_x2, g_x2) - jnp.maximum(q_x1, g_x1), 0.0)
    ih = jnp.maximum(jnp.minimum(q_y2, g_y2) - jnp.maximum(q_y1, g_y1), 0.0)
    inter = iw * ih                                              # [tq, Gp]
    area_q = (q_x2 - q_x1) * (q_y2 - q_y1)                       # [tq, 1]
    area_g = (g_x2 - g_x1) * (g_y2 - g_y1)                       # [1, Gp]
    union = jnp.maximum(area_q + area_g - inter, _EPS)
    r_u = pl.reciprocal(union, approx=True)
    r_u = r_u * (2.0 - union * r_u)                              # NR step -> ~1e-7 rel err
    iou = inter * r_u

    # ---- generalized IoU; enclosing-box term via approx reciprocal (cost only) ----
    ew = jnp.maximum(jnp.maximum(q_x2, g_x2) - jnp.minimum(q_x1, g_x1), 0.0)
    eh = jnp.maximum(jnp.maximum(q_y2, g_y2) - jnp.minimum(q_y1, g_y1), 0.0)
    enc = jnp.maximum(ew * eh, _EPS)
    giou = iou - (enc - union) * pl.reciprocal(enc, approx=True)

    # ---- get_in_boxes_info: boolean masks + selects, single fused fg reduction ----
    in_box = ((q_cx > g_x1) & (q_cx < g_x2) &
              (q_cy > g_y1) & (q_cy < g_y2))                     # [tq, Gp] bool
    r = CENTER_RADIUS / EXPANDED_STRIDES
    in_ctr = ((q_cx > g_cx - r) & (q_cx < g_cx + r) &
              (q_cy > g_cy - r) & (q_cy < g_cy + r))
    both = in_box & in_ctr & valid                               # is_in_boxes_and_center
    either = (in_box | in_ctr) & valid
    fg = jnp.max(jnp.where(either, 1.0, 0.0), axis=1, keepdims=True) > 0.0  # [tq,1]

    cost = (cost_class - 3.0 * giou
            + jnp.where(both, 0.0, 100.0)
            + jnp.where(fg, 0.0, 10000.0))                       # cost[~fg] += 10000

    cost_ref[0] = cost
    iou_ref[0] = iou


# ---------------------------------------------------------------------------
# Wrapper: large Q tiles, lane-dense class & gt dimensions
# ---------------------------------------------------------------------------
def _use_bf16_focal():
    """bf16 focal polynomial only where the VPU/EUP support bf16 (v6e / v7x)."""
    try:
        kind = jax.devices()[0].device_kind.lower()
    except Exception:
        return False
    return any(tag in kind for tag in ("v6", "v7", "7x"))


def _pick_tiling(Q, B):
    """Pick a large Q tile (working set is tiny), keep megacore occupancy, and
    derive an explicit VMEM limit from the chip capacity."""
    TQ_CAP = 2048
    q8 = _round_up(max(Q, 8), 8)                   # sublane alignment
    if q8 <= TQ_CAP:
        tq, q_pad = q8, q8
    else:
        tq = TQ_CAP
        q_pad = _round_up(q8, tq)
    # v7x has 2 TensorCores: keep at least 2 grid steps when the problem is big
    if B * (q_pad // tq) < 2 and tq >= 2048:
        tq = tq // 2
    try:
        cap = int(pltpu.get_tpu_info().vmem_capacity_bytes)
    except Exception:
        cap = 64 * 1024 * 1024                     # conservative (v7x-sized)
    vmem_limit = int(min(max(cap - (16 << 20), 32 << 20), 100 << 20))
    return q_pad, tq, vmem_limit


def matcher_cost_pallas(pred_logits, pred_boxes, gt_t, labels_pad,
                        tq, vmem_limit, use_bf16_focal):
    """pred_logits [B,Qp,Cp], pred_boxes [B,Qp,4], gt_t [B,4,Gp],
    labels_pad [B,1,Gp] int32 (-1 = pad) -> (cost [B,Qp,Gp], iou [B,Qp,Gp])."""
    B, Qp, Cp = pred_logits.shape
    Gp = labels_pad.shape[-1]
    grid = (B, Qp // tq)                           # q innermost: gt blocks not re-DMAed
    kernel = functools.partial(_matcher_cost_kernel, use_bf16_focal=use_bf16_focal)
    out_shape = (jax.ShapeDtypeStruct((B, Qp, Gp), jnp.float32),
                 jax.ShapeDtypeStruct((B, Qp, Gp), jnp.float32))
    return pl.pallas_call(
        kernel,
        grid=grid,
        in_specs=[
            pl.BlockSpec((1, tq, Cp), lambda b, q: (b, q, 0)),
            pl.BlockSpec((1, tq, 4), lambda b, q: (b, q, 0)),
            pl.BlockSpec((1, 4, Gp), lambda b, q: (b, 0, 0)),
            pl.BlockSpec((1, 1, Gp), lambda b, q: (b, 0, 0)),
        ],
        out_specs=(
            pl.BlockSpec((1, tq, Gp), lambda b, q: (b, q, 0)),
            pl.BlockSpec((1, tq, Gp), lambda b, q: (b, q, 0)),
        ),
        out_shape=out_shape,
        compiler_params=pltpu.CompilerParams(
            dimension_semantics=("parallel", "parallel"),
            vmem_limit_bytes=vmem_limit),
    )(pred_logits, pred_boxes, gt_t, labels_pad)


# ---------------------------------------------------------------------------
# Host-side dynamic-k matching (sequential / data-dependent; exact port)
# TODO(synk): dynamic-k topk + while-loop re-assignment is data-dependent and
# has no clean Pallas equivalent; it runs on host (numpy) after the kernel.
# ---------------------------------------------------------------------------
def dynamic_k_matching_np(cost, pair_wise_ious, num_gt):
    cost = cost.copy()
    matching_matrix = np.zeros_like(cost)
    n_candidate_k = 10
    topk_ious = -np.sort(-pair_wise_ious, axis=0)[:n_candidate_k]
    dynamic_ks = np.clip(topk_ious.sum(0).astype(np.int32), 1, None)
    for gt_idx in range(num_gt):
        k = int(dynamic_ks[gt_idx])
        pos_idx = np.argsort(cost[:, gt_idx], kind="stable")[:k]
        matching_matrix[pos_idx, gt_idx] = 1.0

    anchor_matching_gt = matching_matrix.sum(1)
    if (anchor_matching_gt > 1).sum() > 0:
        cost_argmin = np.argmin(cost[anchor_matching_gt > 1], axis=1)
        matching_matrix[anchor_matching_gt > 1] *= 0
        matching_matrix[anchor_matching_gt > 1, cost_argmin] = 1

    while (matching_matrix.sum(0) == 0).any():
        matched_query_id = matching_matrix.sum(1) > 0
        cost[matched_query_id] += 100000.0
        unmatch_id = np.nonzero(matching_matrix.sum(0) == 0)[0]
        for gt_idx in unmatch_id:
            pos_idx = np.argmin(cost[:, gt_idx])
            matching_matrix[pos_idx, gt_idx] = 1.0
        if (matching_matrix.sum(1) > 1).sum() > 0:
            cost_argmin = np.argmin(cost[anchor_matching_gt > 1], axis=1)
            matching_matrix[anchor_matching_gt > 1] *= 0
            matching_matrix[anchor_matching_gt > 1, cost_argmin] = 1

    assert not (matching_matrix.sum(0) == 0).any()
    selected_query = matching_matrix.sum(1) > 0
    gt_indices = matching_matrix[selected_query].argmax(1)
    cost = np.where(matching_matrix == 0, cost + np.inf, cost)
    matched_query_id = np.argmin(cost, axis=0)
    row_indices = np.arange(int(selected_query.sum()))
    ious = pair_wise_ious[row_indices, gt_indices]  # exact port of reference indexing
    return (selected_query, gt_indices), matched_query_id, ious


def hungarian_matcher_forward(outputs, targets, num_classes):
    """Full forward: Pallas kernel for the cost/IoU hot path, host dynamic-k."""
    pred_logits = np.asarray(outputs["pred_logits"], np.float32)   # [B, Q, C]
    pred_boxes = np.asarray(outputs["pred_boxes"], np.float32)     # [B, Q, 4]
    B, Q, C = pred_logits.shape

    max_g = max(1, max(len(t["labels"]) for t in targets))
    G_pad = _round_up(max_g, 128)                 # lane-dense gt dimension
    C_pad = _round_up(C, 128)                     # lane-dense class dim / MXU K
    Q_pad, tq, vmem_limit = _pick_tiling(Q, B)
    use_bf16 = _use_bf16_focal()

    # host-side padding, built directly in the kernel's layout (no XLA transposes)
    logits_p = np.zeros((B, Q_pad, C_pad), np.float32)
    logits_p[:, :Q, :C] = pred_logits
    boxes_p = np.zeros((B, Q_pad, 4), np.float32)
    boxes_p[:, :Q] = pred_boxes
    gt_t = np.zeros((B, 4, G_pad), np.float32)
    labels_pad = np.full((B, 1, G_pad), -1, np.int32)
    for b in range(B):
        n = len(targets[b]["labels"])
        if n > 0:
            gt_t[b, :, :n] = np.asarray(targets[b]["boxes"], np.float32)[:n].T
            labels_pad[b, 0, :n] = np.asarray(targets[b]["labels"], np.int32)[:n]

    cost, ious = matcher_cost_pallas(
        jnp.asarray(logits_p), jnp.asarray(boxes_p),
        jnp.asarray(gt_t), jnp.asarray(labels_pad), tq, vmem_limit, use_bf16)

    # slice on device before the host transfer (Gp=128 -> a few real gts)
    g_keep = min(G_pad, _round_up(max_g, 8))
    cost = jax.lax.slice(cost, (0, 0, 0), (B, Q, g_keep))
    ious = jax.lax.slice(ious, (0, 0, 0), (B, Q, g_keep))
    jax.block_until_ready((cost, ious))
    cost_np = np.asarray(cost)
    ious_np = np.asarray(ious)

    indices, matched_ids, out_ious = [], [], []
    for b in range(B):
        n = len(targets[b]["labels"])
        if n == 0:
            indices.append((np.zeros(Q, bool), np.arange(0)))
            matched_ids.append(np.arange(0))
            out_ious.append(np.arange(0, dtype=np.float32))
            continue
        idx_b, mq, iou_b = dynamic_k_matching_np(cost_np[b, :, :n], ious_np[b, :, :n], n)
        indices.append(idx_b)
        matched_ids.append(mq)
        out_ious.append(iou_b)
    return (indices, matched_ids, out_ious), cost_np, ious_np


# ---------------------------------------------------------------------------
# Reference (plain numpy, PyTorch-faithful) for the kernel outputs
# ---------------------------------------------------------------------------
def _cost_reference_np(logits, boxes, gtb, gt_labels):
    p = 1.0 / (1.0 + np.exp(-logits))
    neg = (1 - ALPHA) * p ** 2 * (-np.log(1 - p + 1e-8))
    pos = ALPHA * (1 - p) ** 2 * (-np.log(p + 1e-8))
    cost_class = (pos - neg)[:, gt_labels]

    def to_xyxy(b):
        return np.stack([b[:, 0] - b[:, 2] / 2, b[:, 1] - b[:, 3] / 2,
                         b[:, 0] + b[:, 2] / 2, b[:, 1] + b[:, 3] / 2], -1)

    qb, gb = to_xyxy(boxes), to_xyxy(gtb)
    iw = np.clip(np.minimum(qb[:, None, 2], gb[None, :, 2]) - np.maximum(qb[:, None, 0], gb[None, :, 0]), 0, None)
    ih = np.clip(np.minimum(qb[:, None, 3], gb[None, :, 3]) - np.maximum(qb[:, None, 1], gb[None, :, 1]), 0, None)
    inter = iw * ih
    aq = (qb[:, 2] - qb[:, 0]) * (qb[:, 3] - qb[:, 1])
    ag = (gb[:, 2] - gb[:, 0]) * (gb[:, 3] - gb[:, 1])
    union = aq[:, None] + ag[None, :] - inter
    iou = inter / union
    ew = np.clip(np.maximum(qb[:, None, 2], gb[None, :, 2]) - np.minimum(qb[:, None, 0], gb[None, :, 0]), 0, None)
    eh = np.clip(np.maximum(qb[:, None, 3], gb[None, :, 3]) - np.minimum(qb[:, None, 1], gb[None, :, 1]), 0, None)
    enc = ew * eh
    giou = iou - (enc - union) / enc
    cx, cy = boxes[:, 0:1], boxes[:, 1:2]
    in_box = (cx > gb[None, :, 0]) & (cx < gb[None, :, 2]) & (cy > gb[None, :, 1]) & (cy < gb[None, :, 3])
    r = CENTER_RADIUS / EXPANDED_STRIDES
    in_ctr = ((cx > gtb[None, :, 0] - r) & (cx < gtb[None, :, 0] + r) &
              (cy > gtb[None, :, 1] - r) & (cy < gtb[None, :, 1] + r))
    fg = in_box.any(1) | in_ctr.any(1)
    cost = cost_class - 3.0 * giou + 100.0 * (~(in_box & in_ctr))
    cost = cost + 10000.0 * (~fg)[:, None]
    return cost, iou


if __name__ == "__main__":
    B, Q, C = 2, 64, 16
    num_insts = [5, 3]

    key = jax.random.PRNGKey(0)
    k1, k2, k3, k4, k5 = jax.random.split(key, 5)
    pred_logits = np.asarray(jax.random.normal(k1, (B, Q, C), jnp.float32))
    pred_ctr = np.asarray(jax.random.uniform(k2, (B, Q, 2), jnp.float32, 0.05, 0.95))
    pred_wh = np.asarray(jax.random.uniform(k3, (B, Q, 2), jnp.float32, 0.05, 0.4))
    pred_boxes = np.concatenate([pred_ctr, pred_wh], -1)

    targets = []
    gk = [k4, k5]
    for b in range(B):
        n = num_insts[b]
        ka, kb, kc = jax.random.split(gk[b], 3)
        ctr = np.asarray(jax.random.uniform(ka, (n, 2), jnp.float32, 0.1, 0.9))
        wh = np.asarray(jax.random.uniform(kb, (n, 2), jnp.float32, 0.1, 0.5))
        labels = np.asarray(jax.random.randint(kc, (n,), 0, C))
        targets.append({"labels": labels, "boxes": np.concatenate([ctr, wh], -1)})

    (indices, matched_ids, out_ious), cost_np, ious_np = hungarian_matcher_forward(
        {"pred_logits": pred_logits, "pred_boxes": pred_boxes}, targets, C)

    # sanity-check kernel outputs against a plain numpy reference (valid gt columns)
    for b in range(B):
        n = num_insts[b]
        ref_cost, ref_iou = _cost_reference_np(
            pred_logits[b], pred_boxes[b],
            np.asarray(targets[b]["boxes"], np.float32),
            np.asarray(targets[b]["labels"], np.int64))
        # cost tolerance absorbs the bf16 focal/one-hot path + approx reciprocal on GIoU
        np.testing.assert_allclose(cost_np[b, :, :n], ref_cost[:, :n], rtol=5e-3, atol=1e-1)
        # IoU path uses approx reciprocal + one Newton-Raphson step (~1e-7 rel error)
        np.testing.assert_allclose(ious_np[b, :, :n], ref_iou[:, :n], rtol=1e-4, atol=1e-5)
        # matcher invariants
        sel, gt_idx = indices[b]
        assert len(gt_idx) == int(sel.sum())
        assert len(matched_ids[b]) == n

    print("KERNEL_OK")
</pallas_src>

<mosaic_0001>
module attributes {stable_mosaic.version = 11 : i64} {
  func.func @_matcher_cost_kernel(%arg0: i32, %arg1: i32, %arg2: memref<1x64x128xf32, #tpu.memory_space<vmem>>, %arg3: memref<1x64x4xf32, #tpu.memory_space<vmem>>, %arg4: memref<1x4x128xf32, #tpu.memory_space<vmem>>, %arg5: memref<1x1x128xi32, #tpu.memory_space<vmem>>, %arg6: memref<1x64x128xf32, #tpu.memory_space<vmem>>, %arg7: memref<1x64x128xf32, #tpu.memory_space<vmem>>) attributes {dimension_semantics = [#tpu.dimension_semantics<parallel>, #tpu.dimension_semantics<parallel>], iteration_bounds = array<i64: 2, 1>, scalar_prefetch = 0 : i64, scratch_operands = 0 : i64, tpu.core_type = #tpu.core_type<tc>, window_params = [{transform_indices = @transform_0, window_bounds = array<i64: 1, 64, 128>}, {transform_indices = @transform_1, window_bounds = array<i64: 1, 64, 4>}, {transform_indices = @transform_2, window_bounds = array<i64: 1, 4, 128>}, {transform_indices = @transform_3, window_bounds = array<i64: 1, 1, 128>}, {transform_indices = @transform_4, window_bounds = array<i64: 1, 64, 128>}, {transform_indices = @transform_5, window_bounds = array<i64: 1, 64, 128>}]} {
    %c0 = arith.constant 0 : index
    %c0_0 = arith.constant 0 : index
    %c0_1 = arith.constant 0 : index
    %0 = vector.load %arg2[%c0, %c0_0, %c0_1] : memref<1x64x128xf32, #tpu.memory_space<vmem>>, vector<1x64x128xf32>
    %1 = vector.shape_cast %0 : vector<1x64x128xf32> to vector<64x128xf32>
    %c0_2 = arith.constant 0 : index
    %c0_3 = arith.constant 0 : index
    %c0_4 = arith.constant 0 : index
    %2 = vector.load %arg3[%c0_2, %c0_3, %c0_4] : memref<1x64x4xf32, #tpu.memory_space<vmem>>, vector<1x64x4xf32>
    %3 = vector.shape_cast %2 : vector<1x64x4xf32> to vector<64x4xf32>
    %c0_5 = arith.constant 0 : index
    %c0_6 = arith.constant 0 : index
    %c0_7 = arith.constant 0 : index
    %4 = vector.load %arg4[%c0_5, %c0_6, %c0_7] : memref<1x4x128xf32, #tpu.memory_space<vmem>>, vector<1x4x128xf32>
    %5 = vector.shape_cast %4 : vector<1x4x128xf32> to vector<4x128xf32>
    %c0_8 = arith.constant 0 : index
    %c0_9 = arith.constant 0 : index
    %c0_10 = arith.constant 0 : index
    %6 = vector.load %arg5[%c0_8, %c0_9, %c0_10] : memref<1x1x128xi32, #tpu.memory_space<vmem>>, vector<1x1x128xi32>
    %7 = vector.shape_cast %6 : vector<1x1x128xi32> to vector<1x128xi32>
    %8 = math.absf %1 : vector<64x128xf32>
    %cst = arith.constant 0.000000e+00 : f32
    %9 = vector.broadcast %cst : f32 to vector<64x128xf32>
    %10 = arith.subf %9, %8 : vector<64x128xf32>
    %11 = math.exp %10 : vector<64x128xf32>
    %cst_11 = arith.constant 1.000000e+00 : f32
    %12 = vector.broadcast %cst_11 : f32 to vector<64x128xf32>
    %13 = arith.addf %12, %11 : vector<64x128xf32>
    %14 = math.log %13 : vector<64x128xf32>
    %cst_12 = arith.constant 0.000000e+00 : f32
    %15 = vector.broadcast %cst_12 : f32 to vector<64x128xf32>
    %16 = arith.subf %15, %1 : vector<64x128xf32>
    %cst_13 = arith.constant 0.000000e+00 : f32
    %17 = vector.broadcast %cst_13 : f32 to vector<64x128xf32>
    %18 = arith.maximumf %16, %17 : vector<64x128xf32>
    %19 = arith.addf %18, %14 : vector<64x128xf32>
    %cst_14 = arith.constant 0.000000e+00 : f32
    %20 = vector.broadcast %cst_14 : f32 to vector<64x128xf32>
    %21 = arith.maximumf %1, %20 : vector<64x128xf32>
    %22 = arith.addf %21, %14 : vector<64x128xf32>
    %cst_15 = arith.constant 0.000000e+00 : f32
    %23 = vector.broadcast %cst_15 : f32 to vector<64x128xf32>
    %24 = arith.subf %23, %19 : vector<64x128xf32>
    %25 = math.exp %24 : vector<64x128xf32>
    %cst_16 = arith.constant 1.000000e+00 : f32
    %26 = vector.broadcast %cst_16 : f32 to vector<64x128xf32>
    %27 = arith.subf %26, %25 : vector<64x128xf32>
    %28 = arith.mulf %27, %27 : vector<64x128xf32>
    %cst_17 = arith.constant 2.500000e-01 : f32
    %29 = vector.broadcast %cst_17 : f32 to vector<64x128xf32>
    %30 = arith.mulf %29, %28 : vector<64x128xf32>
    %31 = arith.mulf %30, %19 : vector<64x128xf32>
    %32 = arith.mulf %25, %25 : vector<64x128xf32>
    %cst_18 = arith.constant 7.500000e-01 : f32
    %33 = vector.broadcast %cst_18 : f32 to vector<64x128xf32>
    %34 = arith.mulf %33, %32 : vector<64x128xf32>
    %35 = arith.mulf %34, %22 : vector<64x128xf32>
    %36 = arith.subf %31, %35 : vector<64x128xf32>
    %37 = arith.truncf %36 : vector<64x128xf32> to vector<64x128xbf16>
    %38 = tpu.iota {dimensions = array<i32: 0>} : vector<128x128xi32>
    %39 = vector.broadcast %7 : vector<1x128xi32> to vector<128x128xi32>
    %40 = arith.cmpi eq, %38, %39 : vector<128x128xi32>
    %41 = arith.extui %40 : vector<128x128xi1> to vector<128x128xi32>
    %42 = arith.sitofp %41 : vector<128x128xi32> to vector<128x128xf32>
    %43 = arith.truncf %42 : vector<128x128xf32> to vector<128x128xbf16>
    %cst_19 = arith.constant dense<0.000000e+00> : vector<64x128xf32>
    %44 = tpu.matmul %37, %43, %cst_19 {dimension_numbers = #tpu.dot_dimension_numbers<[1], [0], [0], [1], [0, 0, 1, 1], [], []>} : vector<64x128xbf16>, vector<128x128xbf16>, vector<64x128xf32> -> vector<64x128xf32>
    %c0_i32 = arith.constant 0 : i32
    %45 = vector.broadcast %c0_i32 : i32 to vector<1x128xi32>
    %46 = arith.cmpi sge, %7, %45 : vector<1x128xi32>
    %47 = vector.extract_strided_slice %3 {offsets = [0, 0], sizes = [64, 1], strides = [1, 1]} : vector<64x4xf32> to vector<64x1xf32>
    %48 = vector.extract_strided_slice %3 {offsets = [0, 1], sizes = [64, 1], strides = [1, 1]} : vector<64x4xf32> to vector<64x1xf32>
    %49 = vector.extract_strided_slice %3 {offsets = [0, 2], sizes = [64, 1], strides = [1, 1]} : vector<64x4xf32> to vector<64x1xf32>
    %50 = vector.extract_strided_slice %3 {offsets = [0, 3], sizes = [64, 1], strides = [1, 1]} : vector<64x4xf32> to vector<64x1xf32>
    %cst_20 = arith.constant 5.000000e-01 : f32
    %51 = vector.broadcast %cst_20 : f32 to vector<64x1xf32>
    %52 = arith.mulf %51, %49 : vector<64x1xf32>
    %53 = arith.subf %47, %52 : vector<64x1xf32>
    %cst_21 = arith.constant 5.000000e-01 : f32
    %54 = vector.broadcast %cst_21 : f32 to vector<64x1xf32>
    %55 = arith.mulf %54, %50 : vector<64x1xf32>
    %56 = arith.subf %48, %55 : vector<64x1xf32>
    %cst_22 = arith.constant 5.000000e-01 : f32
    %57 = vector.broadcast %cst_22 : f32 to vector<64x1xf32>
    %58 = arith.mulf %57, %49 : vector<64x1xf32>
    %59 = arith.addf %47, %58 : vector<64x1xf32>
    %cst_23 = arith.constant 5.000000e-01 : f32
    %60 = vector.broadcast %cst_23 : f32 to vector<64x1xf32>
    %61 = arith.mulf %60, %50 : vector<64x1xf32>
    %62 = arith.addf %48, %61 : vector<64x1xf32>
    %63 = vector.extract_strided_slice %5 {offsets = [0, 0], sizes = [1, 128], strides = [1, 1]} : vector<4x128xf32> to vector<1x128xf32>
    %64 = vector.extract_strided_slice %5 {offsets = [1, 0], sizes = [1, 128], strides = [1, 1]} : vector<4x128xf32> to vector<1x128xf32>
    %65 = vector.extract_strided_slice %5 {offsets = [2, 0], sizes = [1, 128], strides = [1, 1]} : vector<4x128xf32> to vector<1x128xf32>
    %66 = vector.extract_strided_slice %5 {offsets = [3, 0], sizes = [1, 128], strides = [1, 1]} : vector<4x128xf32> to vector<1x128xf32>
    %cst_24 = arith.constant 5.000000e-01 : f32
    %67 = vector.broadcast %cst_24 : f32 to vector<1x128xf32>
    %68 = arith.mulf %67, %65 : vector<1x128xf32>
    %69 = arith.subf %63, %68 : vector<1x128xf32>
    %cst_25 = arith.constant 5.000000e-01 : f32
    %70 = vector.broadcast %cst_25 : f32 to vector<1x128xf32>
    %71 = arith.mulf %70, %66 : vector<1x128xf32>
    %72 = arith.subf %64, %71 : vector<1x128xf32>
    %cst_26 = arith.constant 5.000000e-01 : f32
    %73 = vector.broadcast %cst_26 : f32 to vector<1x128xf32>
    %74 = arith.mulf %73, %65 : vector<1x128xf32>
    %75 = arith.addf %63, %74 : vector<1x128xf32>
    %cst_27 = arith.constant 5.000000e-01 : f32
    %76 = vector.broadcast %cst_27 : f32 to vector<1x128xf32>
    %77 = arith.mulf %76, %66 : vector<1x128xf32>
    %78 = arith.addf %64, %77 : vector<1x128xf32>
    %79 = vector.broadcast %59 : vector<64x1xf32> to vector<64x128xf32>
    %80 = vector.broadcast %75 : vector<1x128xf32> to vector<64x128xf32>
    %81 = arith.minimumf %79, %80 : vector<64x128xf32>
    %82 = vector.broadcast %53 : vector<64x1xf32> to vector<64x128xf32>
    %83 = vector.broadcast %69 : vector<1x128xf32> to vector<64x128xf32>
    %84 = arith.maximumf %82, %83 : vector<64x128xf32>
    %85 = arith.subf %81, %84 : vector<64x128xf32>
    %cst_28 = arith.constant 0.000000e+00 : f32
    %86 = vector.broadcast %cst_28 : f32 to vector<64x128xf32>
    %87 = arith.maximumf %85, %86 : vector<64x128xf32>
    %88 = vector.broadcast %62 : vector<64x1xf32> to vector<64x128xf32>
    %89 = vector.broadcast %78 : vector<1x128xf32> to vector<64x128xf32>
    %90 = arith.minimumf %88, %89 : vector<64x128xf32>
    %91 = vector.broadcast %56 : vector<64x1xf32> to vector<64x128xf32>
    %92 = vector.broadcast %72 : vector<1x128xf32> to vector<64x128xf32>
    %93 = arith.maximumf %91, %92 : vector<64x128xf32>
    %94 = arith.subf %90, %93 : vector<64x128xf32>
    %cst_29 = arith.constant 0.000000e+00 : f32
    %95 = vector.broadcast %cst_29 : f32 to vector<64x128xf32>
    %96 = arith.maximumf %94, %95 : vector<64x128xf32>
    %97 = arith.mulf %87, %96 : vector<64x128xf32>
    %98 = arith.subf %59, %53 : vector<64x1xf32>
    %99 = arith.subf %62, %56 : vector<64x1xf32>
    %100 = arith.mulf %98, %99 : vector<64x1xf32>
    %101 = arith.subf %75, %69 : vector<1x128xf32>
    %102 = arith.subf %78, %72 : vector<1x128xf32>
    %103 = arith.mulf %101, %102 : vector<1x128xf32>
    %104 = vector.broadcast %100 : vector<64x1xf32> to vector<64x128xf32>
    %105 = vector.broadcast %103 : vector<1x128xf32> to vector<64x128xf32>
    %106 = arith.addf %104, %105 : vector<64x128xf32>
    %107 = arith.subf %106, %97 : vector<64x128xf32>
    %cst_30 = arith.constant 9.99999971E-10 : f32
    %108 = vector.broadcast %cst_30 : f32 to vector<64x128xf32>
    %109 = arith.maximumf %107, %108 : vector<64x128xf32>
    %110 = tpu.reciprocal %109 {approx = true} : vector<64x128xf32> -> vector<64x128xf32>
    %111 = arith.mulf %109, %110 : vector<64x128xf32>
    %cst_31 = arith.constant 2.000000e+00 : f32
    %112 = vector.broadcast %cst_31 : f32 to vector<64x128xf32>
    %113 = arith.subf %112, %111 : vector<64x128xf32>
    %114 = arith.mulf %110, %113 : vector<64x128xf32>
    %115 = arith.mulf %97, %114 : vector<64x128xf32>
    %116 = vector.broadcast %59 : vector<64x1xf32> to vector<64x128xf32>
    %117 = vector.broadcast %75 : vector<1x128xf32> to vector<64x128xf32>
    %118 = arith.maximumf %116, %117 : vector<64x128xf32>
    %119 = vector.broadcast %53 : vector<64x1xf32> to vector<64x128xf32>
    %120 = vector.broadcast %69 : vector<1x128xf32> to vector<64x128xf32>
    %121 = arith.minimumf %119, %120 : vector<64x128xf32>
    %122 = arith.subf %118, %121 : vector<64x128xf32>
    %cst_32 = arith.constant 0.000000e+00 : f32
    %123 = vector.broadcast %cst_32 : f32 to vector<64x128xf32>
    %124 = arith.maximumf %122, %123 : vector<64x128xf32>
    %125 = vector.broadcast %62 : vector<64x1xf32> to vector<64x128xf32>
    %126 = vector.broadcast %78 : vector<1x128xf32> to vector<64x128xf32>
    %127 = arith.maximumf %125, %126 : vector<64x128xf32>
    %128 = vector.broadcast %56 : vector<64x1xf32> to vector<64x128xf32>
    %129 = vector.broadcast %72 : vector<1x128xf32> to vector<64x128xf32>
    %130 = arith.minimumf %128, %129 : vector<64x128xf32>
    %131 = arith.subf %127, %130 : vector<64x128xf32>
    %cst_33 = arith.constant 0.000000e+00 : f32
    %132 = vector.broadcast %cst_33 : f32 to vector<64x128xf32>
    %133 = arith.maximumf %131, %132 : vector<64x128xf32>
    %134 = arith.mulf %124, %133 : vector<64x128xf32>
    %cst_34 = arith.constant 9.99999971E-10 : f32
    %135 = vector.broadcast %cst_34 : f32 to vector<64x128xf32>
    %136 = arith.maximumf %134, %135 : vector<64x128xf32>
    %137 = arith.subf %136, %109 : vector<64x128xf32>
    %138 = tpu.reciprocal %136 {approx = true} : vector<64x128xf32> -> vector<64x128xf32>
    %139 = arith.mulf %137, %138 : vector<64x128xf32>
    %140 = arith.subf %115, %139 : vector<64x128xf32>
    %141 = vector.broadcast %47 : vector<64x1xf32> to vector<64x128xf32>
    %142 = vector.broadcast %69 : vector<1x128xf32> to vector<64x128xf32>
    %143 = arith.cmpf ogt, %141, %142 : vector<64x128xf32>
    %144 = vector.broadcast %47 : vector<64x1xf32> to vector<64x128xf32>
    %145 = vector.broadcast %75 : vector<1x128xf32> to vector<64x128xf32>
    %146 = arith.cmpf olt, %144, %145 : vector<64x128xf32>
    %147 = arith.andi %143, %146 : vector<64x128xi1>
    %148 = vector.broadcast %48 : vector<64x1xf32> to vector<64x128xf32>
    %149 = vector.broadcast %72 : vector<1x128xf32> to vector<64x128xf32>
    %150 = arith.cmpf ogt, %148, %149 : vector<64x128xf32>
    %151 = arith.andi %147, %150 : vector<64x128xi1>
    %152 = vector.broadcast %48 : vector<64x1xf32> to vector<64x128xf32>
    %153 = vector.broadcast %78 : vector<1x128xf32> to vector<64x128xf32>
    %154 = arith.cmpf olt, %152, %153 : vector<64x128xf32>
    %155 = arith.andi %151, %154 : vector<64x128xi1>
    %cst_35 = arith.constant 7.812500e-02 : f32
    %156 = vector.broadcast %cst_35 : f32 to vector<1x128xf32>
    %157 = arith.subf %63, %156 : vector<1x128xf32>
    %158 = vector.broadcast %47 : vector<64x1xf32> to vector<64x128xf32>
    %159 = vector.broadcast %157 : vector<1x128xf32> to vector<64x128xf32>
    %160 = arith.cmpf ogt, %158, %159 : vector<64x128xf32>
    %cst_36 = arith.constant 7.812500e-02 : f32
    %161 = vector.broadcast %cst_36 : f32 to vector<1x128xf32>
    %162 = arith.addf %63, %161 : vector<1x128xf32>
    %163 = vector.broadcast %47 : vector<64x1xf32> to vector<64x128xf32>
    %164 = vector.broadcast %162 : vector<1x128xf32> to vector<64x128xf32>
    %165 = arith.cmpf olt, %163, %164 : vector<64x128xf32>
    %166 = arith.andi %160, %165 : vector<64x128xi1>
    %cst_37 = arith.constant 7.812500e-02 : f32
    %167 = vector.broadcast %cst_37 : f32 to vector<1x128xf32>
    %168 = arith.subf %64, %167 : vector<1x128xf32>
    %169 = vector.broadcast %48 : vector<64x1xf32> to vector<64x128xf32>
    %170 = vector.broadcast %168 : vector<1x128xf32> to vector<64x128xf32>
    %171 = arith.cmpf ogt, %169, %170 : vector<64x128xf32>
    %172 = arith.andi %166, %171 : vector<64x128xi1>
    %cst_38 = arith.constant 7.812500e-02 : f32
    %173 = vector.broadcast %cst_38 : f32 to vector<1x128xf32>
    %174 = arith.addf %64, %173 : vector<1x128xf32>
    %175 = vector.broadcast %48 : vector<64x1xf32> to vector<64x128xf32>
    %176 = vector.broadcast %174 : vector<1x128xf32> to vector<64x128xf32>
    %177 = arith.cmpf olt, %175, %176 : vector<64x128xf32>
    %178 = arith.andi %172, %177 : vector<64x128xi1>
    %179 = arith.andi %155, %178 : vector<64x128xi1>
    %180 = vector.broadcast %46 : vector<1x128xi1> to vector<64x128xi1>
    %181 = arith.andi %179, %180 : vector<64x128xi1>
    %182 = arith.ori %155, %178 : vector<64x128xi1>
    %183 = vector.broadcast %46 : vector<1x128xi1> to vector<64x128xi1>
    %184 = arith.andi %182, %183 : vector<64x128xi1>
    %cst_39 = arith.constant 1.000000e+00 : f32
    %cst_40 = arith.constant 0.000000e+00 : f32
    %185 = vector.broadcast %cst_39 : f32 to vector<64x128xf32>
    %186 = vector.broadcast %cst_40 : f32 to vector<64x128xf32>
    %187 = arith.select %184, %185, %186 : vector<64x128xi1>, vector<64x128xf32>
    %cst_41 = arith.constant dense<0xFF800000> : vector<64xf32>
    %188 = vector.multi_reduction <maximumf>, %187, %cst_41 [1] : vector<64x128xf32> to vector<64xf32>
    %189 = vector.shape_cast %188 : vector<64xf32> to vector<64x1xf32>
    %cst_42 = arith.constant 0.000000e+00 : f32
    %190 = vector.broadcast %cst_42 : f32 to vector<64x1xf32>
    %191 = arith.cmpf ogt, %189, %190 : vector<64x1xf32>
    %cst_43 = arith.constant 3.000000e+00 : f32
    %192 = vector.broadcast %cst_43 : f32 to vector<64x128xf32>
    %193 = arith.mulf %192, %140 : vector<64x128xf32>
    %194 = arith.subf %44, %193 : vector<64x128xf32>
    %cst_44 = arith.constant 0.000000e+00 : f32
    %cst_45 = arith.constant 1.000000e+02 : f32
    %195 = vector.broadcast %cst_44 : f32 to vector<64x128xf32>
    %196 = vector.broadcast %cst_45 : f32 to vector<64x128xf32>
    %197 = arith.select %181, %195, %196 : vector<64x128xi1>, vector<64x128xf32>
    %198 = arith.addf %194, %197 : vector<64x128xf32>
    %cst_46 = arith.constant 0.000000e+00 : f32
    %cst_47 = arith.constant 1.000000e+04 : f32
    %199 = vector.broadcast %cst_46 : f32 to vector<64x1xf32>
    %200 = vector.broadcast %cst_47 : f32 to vector<64x1xf32>
    %201 = arith.select %191, %199, %200 : vector<64x1xi1>, vector<64x1xf32>
    %202 = vector.broadcast %201 : vector<64x1xf32> to vector<64x128xf32>
    %203 = arith.addf %198, %202 : vector<64x128xf32>
    %c0_48 = arith.constant 0 : index
    %c0_49 = arith.constant 0 : index
    %c0_50 = arith.constant 0 : index
    %204 = vector.load %arg6[%c0_48, %c0_49, %c0_50] : memref<1x64x128xf32, #tpu.memory_space<vmem>>, vector<1x64x128xf32>
    %205 = vector.shape_cast %204 : vector<1x64x128xf32> to vector<64x128xf32>
    %206 = vector.shape_cast %203 : vector<64x128xf32> to vector<1x64x128xf32>
    tpu.vector_store %arg6[%c0_48, %c0_49, %c0_50], %206 {strides = array<i32>} : memref<1x64x128xf32, #tpu.memory_space<vmem>>, vector<1x64x128xf32>,
    %c0_51 = arith.constant 0 : index
    %c0_52 = arith.constant 0 : index
    %c0_53 = arith.constant 0 : index
    %207 = vector.load %arg7[%c0_51, %c0_52, %c0_53] : memref<1x64x128xf32, #tpu.memory_space<vmem>>, vector<1x64x128xf32>
    %208 = vector.shape_cast %207 : vector<1x64x128xf32> to vector<64x128xf32>
    %209 = vector.shape_cast %115 : vector<64x128xf32> to vector<1x64x128xf32>
    tpu.vector_store %arg7[%c0_51, %c0_52, %c0_53], %209 {strides = array<i32>} : memref<1x64x128xf32, #tpu.memory_space<vmem>>, vector<1x64x128xf32>,
    return
  }
  func.func @transform_0(%arg0: i32, %arg1: i32) -> (i32, i32, i32) {
    %c0_i32 = arith.constant 0 : i32
    %c0_i32_0 = arith.constant 0 : i32
    return %arg0, %arg1, %c0_i32 : i32, i32, i32
  }
  func.func @transform_1(%arg0: i32, %arg1: i32) -> (i32, i32, i32) {
    %c0_i32 = arith.constant 0 : i32
    %c0_i32_0 = arith.constant 0 : i32
    return %arg0, %arg1, %c0_i32 : i32, i32, i32
  }
  func.func @transform_2(%arg0: i32, %arg1: i32) -> (i32, i32, i32) {
    %c0_i32 = arith.constant 0 : i32
    %c0_i32_0 = arith.constant 0 : i32
    %c0_i32_1 = arith.constant 0 : i32
    return %arg0, %c0_i32, %c0_i32_0 : i32, i32, i32
  }
  func.func @transform_3(%arg0: i32, %arg1: i32) -> (i32, i32, i32) {
    %c0_i32 = arith.constant 0 : i32
    %c0_i32_0 = arith.constant 0 : i32
    %c0_i32_1 = arith.constant 0 : i32
    return %arg0, %c0_i32, %c0_i32_0 : i32, i32, i32
  }
  func.func @transform_4(%arg0: i32, %arg1: i32) -> (i32, i32, i32) {
    %c0_i32 = arith.constant 0 : i32
    %c0_i32_0 = arith.constant 0 : i32
    return %arg0, %arg1, %c0_i32 : i32, i32, i32
  }
  func.func @transform_5(%arg0: i32, %arg1: i32) -> (i32, i32, i32) {
    %c0_i32 = arith.constant 0 : i32
    %c0_i32_0 = arith.constant 0 : i32
    return %arg0, %arg1, %c0_i32 : i32, i32, i32
  }
}

</mosaic_0001>

<bundles_post_ra>
// kernel: tpu_custom_call.1
= control target key start
LH: loop header
LB: loop body
LE: loop exit
PB: predicated region body
PF: predicated region fallthrough
CT: control target
= control target key end

     0   :  { %11 = vsyncpa [#allocation3], 0  ;;  %s3459_s0 = inlined_call_operand.vmem [shape: f32[2,64,128], index: 0, kind: input, shape index: {}]   ;;  %s3460_s1 = inlined_call_operand.vmem [shape: f32[2,64,4], index: 1, kind: input, shape index: {}]   ;;  %s3461_s2 = inlined_call_operand.vmem [shape: f32[2,4,128], index: 2, kind: input, shape index: {}]   ;;  %s3462_s3 = inlined_call_operand.vmem [shape: s32[2,1,128], index: 3, kind: input, shape index: {}]   ;;  %s3463_s4 = inlined_call_operand.hbm [shape: f32[2,64,128], index: 4, kind: output, shape index: {0}]   ;;  %s3464_s5 = inlined_call_operand.hbm [shape: f32[2,64,128], index: 5, kind: output, shape index: {1}]  }
   0x1   :  { %13 = vsyncpa [#allocation3 + $0x1], 0 }
   0x2   :  { %14 = vsyncpa [#allocation5], 0 }
   0x3   :  { %16 = vsyncpa [#allocation5 + $0x1], 0  ;;  %s2195_s18 = smov 0   ;;  %s2197_s19 = smov 0  }
   0x4   :  { %s2199_s20 = smov 0   ;;  %s2201_s21 = smov 0  }
   0x5   :  { %s2203_s22 = smov 0   ;;  %s2205_s23 = smov 0  }
   0x6 LB: > { %s1780_s24 = sadd.s32 4294967295, %s2151_s23   ;;  %s1781_s25 = sadd.s32 4294967294, %s2151_s23   ;;  %s2151_s23 = sphi %s2205_s23, %s22_s23   ;;  %s2147_s22 = sphi %s2203_s22, %s3556_s22   ;;  %s2143_s21 = sphi %s2201_s21, %s3555_s21   ;;  %s2139_s20 = sphi %s2199_s20, %s3554_s20   ;;  %s2135_s19 = sphi %s2197_s19, %s3553_s19   ;;  %s2131_s18 = sphi %s2195_s18, %s3552_s18  }
   0x7   : > { %s34_s26 = sadd.s32 1, %s2147_s22  ;;  %s151_s27 = sadd.s32 1, %s2139_s20 }
   0x8   : > { %p36_p0 = scmp.ge.s32.totalorder %s34_s26, 2  ;;  %p161_p1 = scmp.ne.s32.totalorder %s2139_s20, %s2135_s19 }
   0x9   : > { %p162_p2 = scmp.eq.s32.totalorder %s1780_s24, 1  ;;  %p167_p3 = scmp.ne.s32.totalorder %s2135_s19, %s2131_s18 }
   0xa   : > { %s3558_s26 = smov (%p36_p0, %s34_s26), 0  ;;  %p168_p5 = scmp.eq.s32.totalorder %s1781_s25, 1 }
   0xb   : > { %p2235_p4 = por %p162_p2, %p161_p1  ;;  %s146_s29 = ssub.s32 %s2147_s22, %s3558_s26 }
   0xc   : > { %p1784_p6 = scmp.ge.s32.totalorder %s2151_s23, 1  ;;  %p149_p7 = scmp.eq.s32.totalorder %s146_s29, 0 }
   0xd   : > { %p2242_p8 = por %p168_p5, %p167_p3  ;;  %p253_p9 = scmp.lt.s32.totalorder %s2151_s23, 3 }
   0xe   : > { %s2248_s6 = scalar_select %p149_p7, %s2139_s20, %s151_s27  }
   0xf   : > { %p254_p10 = pnand %p1784_p6, %p253_p9 }
  0x10   : > { %p307_p11 = scmp.lt.s32.totalorder (!%p254_p10), %s2143_s21, 1  ;;  %s2155_s12 = smov (!%p254_p10), 126  }
  0x11   : > { %257 = sbr.rel (%p254_p10) target bundleno = 592 (0x250), region = 36  ;;  %s2157_s25 = smov (!%p254_p10), 127  }
  0x12   : > { %s1835_s13 = sshll.u32 (!%p254_p10), %s2143_s21, 10 }
  0x13   : > { %s3350_s17 = scalar_lea.hbm (!%p254_p10), %s3464_s5, %s1835_s13 }
  0x16   : > { %v2153_v0 = vmov 0   ;;  %v3465_v1 = vmov 1   ;;  %s2254_s7 = scalar_select %p307_p11, %s2143_s21, 1  ;;  %v542_v38 = vlaneseq }
  0x17   : > { %1959 = vset.pattern.permute.xlu1 %v2153_v0  ;;  %1961 = vset.pattern.permute.xlu0 %v3465_v1 }
  0x18   : > { %s1833_s8 = sshll.u32 %s2254_s7, 6  ;;  %v2309_v43 = vshrl.u32 %v542_v38, 7  ;;  %s332_s24 = scalar_lea.vmem %s3462_s3, %s2254_s7 }
  0x19   : > { %s324_s11 = scalar_lea.vmem %s3460_s1, %s1833_s8  ;;  %s2288_s15 = scalar_lea.vmem %s3459_s0, %s1833_s8  ;;  %v2318_v45 = vld [vmem:[%s332_s24] sm:$0x1] }
  0x1a   : > { %v2260_v2 = vld [vmem:[%s324_s11] sm:$0xff]  ;;  %v2262_v3 = vld [vmem:[%s324_s11 + $0x8] sm:$0xff]  ;;  %v2265_v5 = vld [vmem:[%s324_s11 + $0x10] sm:$0xff]  ;;  %v2316_v44 = vsub.s32 0, %v2309_v43  ;;  %v557_v50 = vadd.s32 112, %v2309_v43  ;;  %v558_v51 = vadd.s32 120, %v2309_v43 }
  0x1b   : > { %v685_v4 = vmul.f32 0.5, %v2260_v2  ;;  %v687_v6 = vmul.f32 0.5, %v2265_v5  ;;  %v2268_v7 = vld [vmem:[%s324_s11 + $0x18] sm:$0xff]  ;;  %v686_v8 = vmul.f32 0.5, %v2262_v3  ;;  %v2271_v9 = vld [vmem:[%s324_s11 + $0x20] sm:$0xff]  ;;  %v2274_v11 = vld [vmem:[%s324_s11 + $0x28] sm:$0xff] }
  0x1c   : > { %v688_v10 = vmul.f32 0.5, %v2268_v7  ;;  %v689_v12 = vmul.f32 0.5, %v2271_v9  ;;  %v2277_v13 = vld [vmem:[%s324_s11 + $0x30] sm:$0xff]  ;;  %v690_v14 = vmul.f32 0.5, %v2274_v11  ;;  %v2280_v15 = vld [vmem:[%s324_s11 + $0x38] sm:$0xff]  ;;  %v2292_v18 = vld [vmem:[%s2288_s15] sm:$0xff]  ;;  %v2322_v46 = vrot.slane %v2318_v45, %v2316_v44 }
  0x1d   : > { %701 = vrot.lane.b32.xlu0 %v685_v4, %s2155_s12  ;;  %705 = vrot.lane.b32.xlu1 %v687_v6, %s2155_s12  ;;  %v691_v16 = vmul.f32 0.5, %v2277_v13  ;;  %v692_v17 = vmul.f32 0.5, %v2280_v15  ;;  %v2295_v19 = vld [vmem:[%s2288_s15 + $0x8] sm:$0xff]  ;;  %v354_v20 = vand.u32 2147483647, %v2292_v18  ;;  %v2301_v22 = vld [vmem:[%s2288_s15 + $0x10] sm:$0xff] }
  0x1e   : > { %v355_v21 = vand.u32 2147483647, %v2295_v19  ;;  %v2304_v23 = vld [vmem:[%s2288_s15 + $0x18] sm:$0xff]  ;;  %v356_v24 = vand.u32 2147483647, %v2301_v22  ;;  %v410_v47 = vsub.f32 0.0, %v2292_v18  ;;  %vm577_vm0 = vcmp.eq.s32.totalorder %v557_v50, %v2322_v46 }
  0x1f   : > { %v357_v25 = vand.u32 2147483647, %v2304_v23  ;;  %v362_v26 = vsub.f32 0.0, %v354_v20  ;;  %v411_v48 = vsub.f32 0.0, %v2295_v19  ;;  %v412_v52 = vsub.f32 0.0, %v2301_v22  ;;  %s1791_s27 = sshll.u32 %s2254_s7, 2 }
  0x20   : > { %v363_v27 = vsub.f32 0.0, %v355_v21  ;;  %v364_v28 = vsub.f32 0.0, %v356_v24  ;;  %v413_v53 = vsub.f32 0.0, %v2304_v23  ;;  %v418_v56 = vmax.f32 %v410_v47, 0.0  ;;  %s329_s9 = scalar_lea.vmem %s3461_s2, %s1791_s27  ;;  %s3224_s7 = sand.u32 1, %s2135_s19  }
  0x21   : > { %703 = vrot.lane.b32.xlu0 %v686_v8, %s2155_s12  ;;  %707 = vrot.lane.b32.xlu1 %v688_v10, %s2155_s12  ;;  %v365_v29 = vsub.f32 0.0, %v357_v25  ;;  %v370_v30 = vmul.f32 1.442695, %v362_v26  ;;  %v419_v57 = vmax.f32 %v411_v48, 0.0  ;;  %vm578_vm1 = vcmp.eq.s32.totalorder %v558_v51, %v2322_v46  ;;  %s1785_s10 = sshll.u32 %s3224_s7, 6  ;;  %s1594_s24 = scalar_lea.sflag [#allocation5], %s3224_s7 }
  0x22   : > { %v372_v31 = vmul.f32 1.442695, %v363_v27  ;;  %v374_v32 = vmul.f32 1.442695, %v364_v28  ;;  %vm1808_vm2 = vmpackc.low %vm578_vm1, %vm577_vm0  ;;  %v420_v63 = vmax.f32 %v412_v52, 0.0  ;;  %v421_v4 = vmax.f32 %v413_v53, 0.0 }
  0x23   : > { %v376_v33 = vmul.f32 1.442695, %v365_v29  ;;  %1965 = vpow2.f32 %v370_v30  ;;  %v2156_v6 = vmov 1.0|1.0   ;;  %v555_v8 = vadd.s32 96, %v2309_v43  ;;  %s3232_s11 = scalar_lea.vmem [#allocation4], %s1785_s10 }
  0x24   : > { %1967 = vpow2.f32 %v372_v31  ;;  %1849 = vmatprep.subr.msk.bf16.mxu0 %vm1808_vm2, %v2156_v6  ;;  %v556_v10 = vadd.s32 104, %v2309_v43  ;;  %1873 = vmatprep.subr.msk.bf16.mxu1 %vm1808_vm2, %v2156_v6  ;;  %v553_v26 = vadd.s32 80, %v2309_v43  ;;  %v554_v27 = vadd.s32 88, %v2309_v43  ;;  %s1627_s14 = sshll.u32 %s3232_s11, 4  ;;  %s2161_s27 = smov [#allocation4]   ;;  %s3352_s14 = int_to_ptr.vmem [resolvable:$true] %s1627_s14 }
  0x25   : > { %709 = vrot.lane.b32.xlu0 %v689_v12, %s2155_s12  ;;  %711 = vrot.lane.b32.xlu1 %v690_v14, %s2155_s12  ;;  %1969 = vpow2.f32 %v374_v32  ;;  %vm575_vm3 = vcmp.eq.s32.totalorder %v555_v8, %v2322_v46  ;;  %v551_v31 = vadd.s32 64, %v2309_v43  ;;  %v552_v32 = vadd.s32 72, %v2309_v43  ;;  %s2049_s29 = sshll.u32 %s2161_s27, 4  ;;  %s2050_s29 = int_to_ptr.vmem [resolvable:$false] %s2049_s29 }
  0x26   : > { %1971 = vpow2.f32 %v376_v33  ;;  %1850 = vmatpush3.bf16.msk.msra.mxu0 %vm1808_vm2, %v2156_v6  ;;  %1881 = vmatpush3.bf16.msk.msra.mxu1 %vm1808_vm2, %v2156_v6  ;;  %vm576_vm4 = vcmp.eq.s32.totalorder %v556_v10, %v2322_v46  ;;  %vm573_vm6 = vcmp.eq.s32.totalorder %v553_v26, %v2322_v46  ;;  %vm574_vm7 = vcmp.eq.s32.totalorder %v554_v27, %v2322_v46  ;;  %s2051_s8 = scalar_lea.vmem %s2050_s29, 2048  ;;  %p2052_p1 = scmp.lt.s32.totalorder %s3352_s14, %s2050_s29 }
  0x27   : > { %vm1810_vm5 = vmpackc.low %vm576_vm4, %vm575_vm3  ;;  %vm571_vm9 = vcmp.eq.s32.totalorder %v551_v31, %v2322_v46  ;;  %vm572_vm10 = vcmp.eq.s32.totalorder %v552_v32, %v2322_v46  ;;  %v548_v47 = vadd.s32 40, %v2309_v43 }
  0x28   : > { %1851 = vmatprep.subr.msk.bf16.mxu0 %vm1810_vm5, %v2156_v6  ;;  %1874 = vmatprep.subr.msk.bf16.mxu1 %vm1810_vm5, %v2156_v6  ;;  %vm1812_vm8 = vmpackc.low %vm574_vm7, %vm573_vm6 }
  0x29   : > { %713 = vrot.lane.b32.xlu0 %v691_v16, %s2155_s12  ;;  %715 = vrot.lane.b32.xlu1 %v692_v17, %s2155_s12  ;;  %vm1814_vm11 = vmpackc.low %vm572_vm10, %vm571_vm9  ;;  %vm568_vm0 = vcmp.eq.s32.totalorder %v548_v47, %v2322_v46  ;;  %s3245_s12 = scalar_lea.vmem [#allocation2], %s1785_s10 }
  0x2a   : > { %1852 = vmatpush3.bf16.msk.msra.mxu0 %vm1810_vm5, %v2156_v6  ;;  %1882 = vmatpush3.bf16.msk.msra.mxu1 %vm1810_vm5, %v2156_v6  ;;  %vm563_vm5 = vcmp.eq.s32.totalorder %v2309_v43, %v2322_v46 }
  0x2b   : > { %1853 = vmatprep.subr.msk.bf16.mxu0 %vm1812_vm8, %v2156_v6  ;;  %1875 = vmatprep.subr.msk.bf16.mxu1 %vm1812_vm8, %v2156_v6 }
  0x2d   : > { %1259 = vperm.xlu1 %1959, %v2262_v3  }
  0x2e   : > { %1854 = vmatpush3.bf16.msk.msra.mxu0 %vm1812_vm8, %v2156_v6  ;;  %1883 = vmatpush3.bf16.msk.msra.mxu1 %vm1812_vm8, %v2156_v6  ;;  %vm684_vm8 = vcmp.ge.s32.totalorder %v2318_v45, 0 }
  0x2f   : > { %1855 = vmatprep.subr.msk.bf16.mxu0 %vm1814_vm11, %v2156_v6  ;;  %1876 = vmatprep.subr.msk.bf16.mxu1 %vm1814_vm11, %v2156_v6 }
  0x30   : > { %v1966_v34 = vpop.eup %1965 }
  0x31   : > { %1264 = vperm.xlu1 %1959, %v2265_v5   ;;  %v1968_v35 = vpop.eup %1967  ;;  %v386_v36 = vadd.f32 1.0, %v1966_v34  ;;  %v549_v34 = vadd.s32 48, %v2309_v43 }
  0x32   : > { %v1970_v37 = vpop.eup %1969  ;;  %v387_v39 = vadd.f32 1.0, %v1968_v35  ;;  %v550_v35 = vadd.s32 56, %v2309_v43  ;;  %1856 = vmatpush3.bf16.msk.msra.mxu0 %vm1814_vm11, %v2156_v6  ;;  %1884 = vmatpush3.bf16.msk.msra.mxu1 %vm1814_vm11, %v2156_v6 }
  0x33   : > { %v1972_v40 = vpop.eup %1971  ;;  %1973 = vlog2.f32 %v386_v36  ;;  %v388_v41 = vadd.f32 1.0, %v1970_v37  ;;  %vm569_vm12 = vcmp.eq.s32.totalorder %v549_v34, %v2322_v46  ;;  %v2389_v36 = vld [vmem:[%s2288_s15 + $0x20] sm:$0xff]  ;;  %v2392_v37 = vld [vmem:[%s2288_s15 + $0x28] sm:$0xff] }
  0x34   : > { %1975 = vlog2.f32 %v387_v39  ;;  %v389_v42 = vadd.f32 1.0, %v1972_v40  ;;  %vm570_vm13 = vcmp.eq.s32.totalorder %v550_v35, %v2322_v46  ;;  %v358_v38 = vand.u32 2147483647, %v2389_v36  ;;  %v2397_v40 = vld [vmem:[%s2288_s15 + $0x30] sm:$0xff] }
  0x35   : > { %1274 = vperm.xlu1 %1959, %v2271_v9   ;;  %1977 = vlog2.f32 %v388_v41  ;;  %vm1816_vm14 = vmpackc.low %vm570_vm13, %vm569_vm12  ;;  %v359_v39 = vand.u32 2147483647, %v2392_v37  ;;  %v2400_v41 = vld [vmem:[%s2288_s15 + $0x38] sm:$0xff]  ;;  %v360_v48 = vand.u32 2147483647, %v2397_v40  ;;  %v436_v35 = vmax.f32 %v2301_v22, 0.0 }
  0x36   : > { %1979 = vlog2.f32 %v389_v42  ;;  %1857 = vmatprep.subr.msk.bf16.mxu0 %vm1816_vm14, %v2156_v6  ;;  %v547_v42 = vadd.s32 32, %v2309_v43  ;;  %1877 = vmatprep.subr.msk.bf16.mxu1 %vm1816_vm14, %v2156_v6  ;;  %v366_v50 = vsub.f32 0.0, %v358_v38  ;;  %v361_v51 = vand.u32 2147483647, %v2400_v41 }
  0x37   : > { %1858 = vmatpush3.bf16.msk.msra.mxu0 %vm1816_vm14, %v2156_v6  ;;  %1885 = vmatpush3.bf16.msk.msra.mxu1 %vm1816_vm14, %v2156_v6  ;;  %v437_v38 = vmax.f32 %v2304_v23, 0.0 }
  0x38   : > { %vm567_vm15 = vcmp.eq.s32.totalorder %v547_v42, %v2322_v46 }
  0x39   : > { %1284 = vperm.xlu1 %1959, %v2277_v13   ;;  %vm1818_vm1 = vmpackc.low %vm568_vm0, %vm567_vm15 }
  0x3a   : > { %1859 = vmatprep.subr.msk.bf16.mxu0 %vm1818_vm1, %v2156_v6  ;;  %1878 = vmatprep.subr.msk.bf16.mxu1 %vm1818_vm1, %v2156_v6 }
  0x3b   : > { %1860 = vmatpush3.bf16.msk.msra.mxu0 %vm1818_vm1, %v2156_v6  ;;  %1886 = vmatpush3.bf16.msk.msra.mxu1 %vm1818_vm1, %v2156_v6 }
  0x40   : > { %v1974_v49 = vpop.eup %1973 }
  0x41   : > { %v1976_v54 = vpop.eup %1975  ;;  %v2330_v55 = vmul.f32 0.6931472, %v1974_v49 }
  0x42   : > { %v1978_v58 = vpop.eup %1977  ;;  %v2334_v59 = vmul.f32 0.6931472, %v1976_v54  ;;  %v367_v54 = vsub.f32 0.0, %v359_v39 }
  0x43   : > { %v1980_v60 = vpop.eup %1979  ;;  %v2337_v61 = vadd.f32 %v418_v56, %v2330_v55  ;;  %v2339_v62 = vmul.f32 0.6931472, %v1978_v58  ;;  %v545_v56 = vadd.s32 16, %v2309_v43 }
  0x44   : > { %v2345_v12 = vadd.f32 %v419_v57, %v2334_v59  ;;  %v2347_v14 = vmul.f32 0.6931472, %v1980_v60  ;;  %v546_v57 = vadd.s32 24, %v2309_v43  ;;  %v368_v60 = vsub.f32 0.0, %v360_v48 }
  0x45   : > { %v450_v16 = vsub.f32 0.0, %v2337_v61  ;;  %v2353_v17 = vadd.f32 %v420_v63, %v2339_v62  ;;  %v434_v63 = vmax.f32 %v2292_v18, 0.0  ;;  %vm565_vm2 = vcmp.eq.s32.totalorder %v545_v56, %v2322_v46 }
  0x46   : > { %v451_v20 = vsub.f32 0.0, %v2345_v12  ;;  %v2360_v21 = vadd.f32 %v421_v4, %v2347_v14  ;;  %v435_v4 = vmax.f32 %v2295_v19, 0.0  ;;  %vm566_vm3 = vcmp.eq.s32.totalorder %v546_v57, %v2322_v46 }
  0x47   : > { %v458_v24 = vmul.f32 1.442695, %v450_v16  ;;  %v452_v25 = vsub.f32 0.0, %v2353_v17  ;;  %v378_v16 = vmul.f32 1.442695, %v366_v50  ;;  %vm2422_vm4 = vmpackc.low %vm566_vm3, %vm565_vm2  ;;  %v445_v48 = vadd.f32 %v437_v38, %v2347_v14 }
  0x48   : > { %v460_v28 = vmul.f32 1.442695, %v451_v20  ;;  %v453_v29 = vsub.f32 0.0, %v2360_v21  ;;  %v369_v20 = vsub.f32 0.0, %v361_v51  ;;  %v380_v27 = vmul.f32 1.442695, %v367_v54  ;;  %1861 = vmatprep.subr.msk.bf16.mxu0 %vm2422_vm4, %v2156_v6  ;;  %1879 = vmatprep.subr.msk.bf16.mxu1 %vm2422_vm4, %v2156_v6 }
  0x49   : > { %1981 = vpow2.f32 %v458_v24  ;;  %v462_v30 = vmul.f32 1.442695, %v452_v25  ;;  %v442_v25 = vadd.f32 %v434_v63, %v2330_v55  ;;  %v382_v31 = vmul.f32 1.442695, %v368_v60  ;;  %1862 = vmatpush3.bf16.msk.msra.mxu0 %vm2422_vm4, %v2156_v6  ;;  %1887 = vmatpush3.bf16.msk.msra.mxu1 %vm2422_vm4, %v2156_v6 }
  0x4a   : > { %1983 = vpow2.f32 %v460_v28  ;;  %v464_v33 = vmul.f32 1.442695, %v453_v29  ;;  %v544_v28 = vadd.s32 8, %v2309_v43  ;;  %v443_v29 = vadd.f32 %v435_v4, %v2334_v59 }
  0x4b   : > { %1985 = vpow2.f32 %v462_v30  ;;  %v384_v14 = vmul.f32 1.442695, %v369_v20  ;;  %v417_v38 = vsub.f32 0.0, %v2400_v41 }
  0x4c   : > { %1987 = vpow2.f32 %v464_v33  ;;  %vm564_vm6 = vcmp.eq.s32.totalorder %v544_v28, %v2322_v46 }
  0x4d   : > { %vm1822_vm7 = vmpackc.low %vm564_vm6, %vm563_vm5  ;;  %1989 = vpow2.f32 %v378_v16 }
  0x4e   : > { %1863 = vmatprep.subr.msk.bf16.mxu0 %vm1822_vm7, %v2156_v6  ;;  %1880 = vmatprep.subr.msk.bf16.mxu1 %vm1822_vm7, %v2156_v6  ;;  %1991 = vpow2.f32 %v380_v27 }
  0x4f   : > { %1864 = vmatpush3.bf16.msk.msra.mxu0 %vm1822_vm7, %v2156_v6  ;;  %1888 = vmatpush3.bf16.msk.msra.mxu1 %vm1822_vm7, %v2156_v6  ;;  %1993 = vpow2.f32 %v382_v31 }
  0x50   : > { %1995 = vpow2.f32 %v384_v14 }
  0x56   : > { %v1982_v49 = vpop.eup %1981 }
  0x57   : > { %v1984_v52 = vpop.eup %1983  ;;  %v474_v53 = vsub.f32 1.0, %v1982_v49  ;;  %v506_v10 = vmul.f32 %v1982_v49, %v1982_v49 }
  0x58   : > { %v475_v58 = vsub.f32 1.0, %v1984_v52  ;;  %v1986_v19 = vpop.eup %1985  ;;  %v507_v30 = vmul.f32 %v1984_v52, %v1984_v52 }
  0x59   : > { %v482_v8 = vmul.f32 %v474_v53, %v474_v53  ;;  %v1988_v32 = vpop.eup %1987  ;;  %v514_v34 = vmul.f32 0.75, %v506_v10  ;;  %v476_v47 = vsub.f32 1.0, %v1986_v19  ;;  %v508_v50 = vmul.f32 %v1986_v19, %v1986_v19 }
  0x5a   : > { %v483_v26 = vmul.f32 %v475_v58, %v475_v58  ;;  %v515_v59 = vmul.f32 0.75, %v507_v30  ;;  %v477_v49 = vsub.f32 1.0, %v1988_v32  ;;  %v509_v51 = vmul.f32 %v1988_v32, %v1988_v32  ;;  %v1990_v16 = vpop.eup %1989 }
  0x5b   : > { %v490_v18 = vmul.f32 0.25, %v482_v8  ;;  %v522_v42 = vmul.f32 %v514_v34, %v442_v25  ;;  %v484_v23 = vmul.f32 %v476_v47, %v476_v47  ;;  %v516_v52 = vmul.f32 0.75, %v508_v50  ;;  %v1992_v24 = vpop.eup %1991 }
  0x5c   : > { %v491_v55 = vmul.f32 0.25, %v483_v26  ;;  %v523_v22 = vmul.f32 %v515_v59, %v443_v29  ;;  %v517_v54 = vmul.f32 0.75, %v509_v51  ;;  %v390_v25 = vadd.f32 1.0, %v1990_v16  ;;  %v1994_v26 = vpop.eup %1993 }
  0x5d   : > { %v498_v33 = vmul.f32 %v490_v18, %v2337_v61  ;;  %v444_v61 = vadd.f32 %v436_v35, %v2339_v62  ;;  %v485_v62 = vmul.f32 %v477_v49, %v477_v49  ;;  %v492_v53 = vmul.f32 0.25, %v484_v23  ;;  %v1996_v27 = vpop.eup %1995 }
  0x5e   : > { %v499_v39 = vmul.f32 %v491_v55, %v2345_v12  ;;  %v525_v63 = vmul.f32 %v517_v54, %v445_v48  ;;  %v391_v18 = vadd.f32 1.0, %v1992_v24  ;;  %1997 = vlog2.f32 %v390_v25 }
  0x5f   : > { %v530_v46 = vsub.f32 %v498_v33, %v522_v42  ;;  %v493_v57 = vmul.f32 0.25, %v485_v62  ;;  %v524_v58 = vmul.f32 %v516_v52, %v444_v61  ;;  %v500_v60 = vmul.f32 %v492_v53, %v2353_v17 }
  0x60   : > { %v531_v12 = vsub.f32 %v499_v39, %v523_v22  ;;  %v392_v20 = vadd.f32 1.0, %v1994_v26  ;;  %1999 = vlog2.f32 %v391_v18  ;;  %v393_v19 = vadd.f32 1.0, %v1996_v27 }
  0x61   : > { %v501_v4 = vmul.f32 %v493_v57, %v2360_v21  ;;  %v532_v6 = vsub.f32 %v500_v60, %v524_v58  ;;  %v414_v21 = vsub.f32 0.0, %v2389_v36  ;;  %v415_v30 = vsub.f32 0.0, %v2392_v37 }
  0x62   : > { %v538_v56 = vpack.c.bf16 %v531_v12, %v530_v46  ;;  %2001 = vlog2.f32 %v392_v20  ;;  %v416_v33 = vsub.f32 0.0, %v2397_v40  ;;  %v425_v12 = vmax.f32 %v417_v38, 0.0 }
  0x63   : > { %v533_v8 = vsub.f32 %v501_v4, %v525_v63  ;;  %2003 = vlog2.f32 %v393_v19  ;;  %v422_v55 = vmax.f32 %v414_v21, 0.0  ;;  %v423_v59 = vmax.f32 %v415_v30, 0.0 }
  0x64   : > { %1865 = vmatprep.mubr.bf16.mxu0 %v538_v56  ;;  %v424_v50 = vmax.f32 %v416_v33, 0.0 }
  0x65   : > { %v539_v10 = vpack.c.bf16 %v533_v8, %v532_v6 }
  0x67   : > { %1866 = vmatmul.mubr.bf16.vlgmr.msra.gmra.mxu0 %v539_v10 }
  0x6b   : > { %v1998_v34 = vpop.eup %1997 }
  0x6c   : > { %v403_v61 = vmul.f32 0.6931472, %v1998_v34 }
  0x6d   : > { %v2000_v39 = vpop.eup %1999 }
  0x6e   : > { %v405_v22 = vmul.f32 0.6931472, %v2000_v39  ;;  %v2471_v48 = vadd.f32 %v422_v55, %v403_v61 }
  0x6f   : > { %v2002_v47 = vpop.eup %2001 }
  0x70   : > { %v2473_v49 = vmul.f32 0.6931472, %v2002_v47  ;;  %v2004_v46 = vpop.eup %2003  ;;  %v2475_v51 = vadd.f32 %v423_v59, %v405_v22  ;;  %v454_v52 = vsub.f32 0.0, %v2471_v48 }
  0x71   : > { %v2482_v54 = vmul.f32 0.6931472, %v2004_v46 }
  0x72   : > { %v455_v53 = vsub.f32 0.0, %v2475_v51  ;;  %v466_v14 = vmul.f32 1.442695, %v454_v52  ;;  %v2487_v56 = vadd.f32 %v424_v50, %v2473_v49 }
  0x73   : > { %v2490_v58 = vadd.f32 %v425_v12, %v2482_v54 }
  0x74   : > { %v468_v57 = vmul.f32 1.442695, %v455_v53  ;;  %2005 = vpow2.f32 %v466_v14  ;;  %v456_v63 = vsub.f32 0.0, %v2487_v56  ;;  %v440_v53 = vmax.f32 %v2397_v40, 0.0 }
  0x75   : > { %v457_v6 = vsub.f32 0.0, %v2490_v58 }
  0x76   : > { %2007 = vpow2.f32 %v468_v57  ;;  %v470_v8 = vmul.f32 1.442695, %v456_v63 }
  0x77   : > { %v472_v10 = vmul.f32 1.442695, %v457_v6 }
  0x78   : > { %2009 = vpow2.f32 %v470_v8 }
  0x79   : > { %2011 = vpow2.f32 %v472_v10 }
  0x8f   : > { %v2456_v17 = vpop.permute.xlu0 %701  ;;  %v706_v29 = vpop.permute.xlu1 %705 }
  0x90   : > { %v2462_v32 = vadd.f32 %v706_v29, %v2265_v5  ;;  %v2494_v60 = vsub.f32 %v2260_v2, %v2456_v17  ;;  %v2504_v24 = vsub.f32 %v2265_v5, %v706_v29  ;;  %v439_v29 = vmax.f32 %v2392_v37, 0.0 }
  0x91   : > { %v733_v40 = vadd.f32 %v2456_v17, %v2260_v2 }
  0x92   : > { %v447_v38 = vadd.f32 %v439_v29, %v405_v22  ;;  %v441_v22 = vmax.f32 %v2400_v41, 0.0 }
  0x93   : > { %v704_v28 = vpop.permute.xlu0 %703  ;;  %v708_v4 = vpop.permute.xlu1 %707 }
  0x94   : > { %v734_v31 = vadd.f32 %v704_v28, %v2262_v3  ;;  %v2501_v16 = vsub.f32 %v2262_v3, %v704_v28  ;;  %v2509_v25 = vsub.f32 %v2268_v7, %v708_v4  ;;  %v2512_v26 = vadd.f32 %v708_v4, %v2268_v7 }
  0x95   : > { %v438_v28 = vmax.f32 %v2389_v36, 0.0  ;;  %v449_v41 = vadd.f32 %v441_v22, %v2482_v54 }
  0x96   : > { %872 = vperm.xlu0 %1961, %v734_v31   ;;  %754 = vperm.xlu1 %1959, %v734_v31   ;;  %v2515_v20 = vsub.f32 %v734_v31, %v2501_v16  ;;  %v2528_v21 = vsub.f32 %v2512_v26, %v2509_v25  ;;  %v2006_v31 = vpop.eup %2005 }
  0x97   : > { %v710_v35 = vpop.permute.xlu0 %709  ;;  %v712_v18 = vpop.permute.xlu1 %711  ;;  %v446_v34 = vadd.f32 %v438_v28, %v403_v61  ;;  %v478_v59 = vsub.f32 1.0, %v2006_v31  ;;  %v510_v39 = vmul.f32 %v2006_v31, %v2006_v31  ;;  %v448_v28 = vadd.f32 %v440_v53, %v2473_v49 }
  0x98   : > { %v2467_v42 = vadd.f32 %v710_v35, %v2271_v9  ;;  %v2521_v27 = vsub.f32 %v2274_v11, %v712_v18  ;;  %v2524_v19 = vadd.f32 %v712_v18, %v2274_v11  ;;  %v2533_v30 = vsub.f32 %v2271_v9, %v710_v35  ;;  %v2008_v55 = vpop.eup %2007 }
  0x99   : > { %v479_v36 = vsub.f32 1.0, %v2008_v55  ;;  %v511_v37 = vmul.f32 %v2008_v55, %v2008_v55  ;;  %v486_v47 = vmul.f32 %v478_v59, %v478_v59  ;;  %v2010_v50 = vpop.eup %2009  ;;  %v518_v12 = vmul.f32 0.75, %v510_v39 }
  0x9a   : > { %759 = vperm.xlu1 %1959, %v2462_v32   ;;  %884 = vperm.xlu0 %1961, %v2467_v42   ;;  %v2540_v33 = vsub.f32 %v2524_v19, %v2521_v27  ;;  %v2012_v14 = vpop.eup %2011  ;;  %v480_v6 = vsub.f32 1.0, %v2010_v50  ;;  %v512_v10 = vmul.f32 %v2010_v50, %v2010_v50 }
  0x9b   : > { %v714_v23 = vpop.permute.xlu0 %713  ;;  %v487_v46 = vmul.f32 %v479_v36, %v479_v36  ;;  %v519_v52 = vmul.f32 0.75, %v511_v37  ;;  %v494_v61 = vmul.f32 0.25, %v486_v47  ;;  %v526_v63 = vmul.f32 %v518_v12, %v446_v34  ;;  %v716_v50 = vpop.permute.xlu1 %715 }
  0x9c   : > { %v2478_v62 = vadd.f32 %v714_v23, %v2277_v13  ;;  %v2543_v35 = vsub.f32 %v2277_v13, %v714_v23  ;;  %v481_v8 = vsub.f32 1.0, %v2012_v14  ;;  %v513_v29 = vmul.f32 %v2012_v14, %v2012_v14 }
  0x9d   : > { %v495_v57 = vmul.f32 0.25, %v487_v46  ;;  %v527_v23 = vmul.f32 %v519_v52, %v447_v38  ;;  %v502_v4 = vmul.f32 %v494_v61, %v2471_v48  ;;  %v520_v31 = vmul.f32 0.75, %v512_v10 }
  0x9e   : > { %769 = vperm.xlu1 %1959, %v2467_v42   ;;  %892 = vperm.xlu0 %1961, %v2478_v62   ;;  %v488_v34 = vmul.f32 %v480_v6, %v480_v6  ;;  %v489_v59 = vmul.f32 %v481_v8, %v481_v8  ;;  %v521_v38 = vmul.f32 0.75, %v513_v29  ;;  %v1462_v29 = vsel %vm684_vm8, 1, %v2153_v0 }
  0x9f   : > { %v503_v18 = vmul.f32 %v495_v57, %v2475_v51  ;;  %v534_v48 = vsub.f32 %v502_v4, %v526_v63  ;;  %v528_v39 = vmul.f32 %v520_v31, %v448_v28 }
  0xa0   : > { %v496_v17 = vmul.f32 0.25, %v488_v34  ;;  %v497_v49 = vmul.f32 0.25, %v489_v59  ;;  %v529_v51 = vmul.f32 %v521_v38, %v449_v41  ;;  %v901_v41 = vsub.s32 1, %v2309_v43 }
  0xa1   : > { %v535_v55 = vsub.f32 %v503_v18, %v527_v23 }
  0xa2   : > { %912 = vperm.xlu0 %1961, %v2494_v60   ;;  %779 = vperm.xlu1 %1959, %v2478_v62   ;;  %v505_v54 = vmul.f32 %v497_v49, %v2490_v58  ;;  %v2586_v58 = vsub.f32 %v2467_v42, %v2533_v30 }
  0xa3   : > { %v540_v36 = vpack.c.bf16 %v535_v55, %v534_v48 }
  0xa4   : > { %v537_v47 = vsub.f32 %v505_v54, %v529_v51 }
  0xa5   : > { %1869 = vmatprep.mubr.bf16.mxu1 %v540_v36  ;;  %v1466_v36 = vrot.slane %v1462_v29, %v2316_v44  ;;  %v3493_v29 = vmov 0 }
  0xa6   : > { %920 = vperm.xlu0 %1961, %v2504_v24   ;;  %801 = vperm.xlu1 %1959, %v2494_v60  }
  0xaa   : > { %997 = vrot.lane.b32.xlu0 %v2515_v20, %s2157_s25  ;;  %811 = vperm.xlu1 %1959, %v2504_v24  }
  0xae   : > { %1001 = vrot.lane.b32.xlu0 %v2528_v21, %s2157_s25  ;;  %821 = vperm.xlu1 %1959, %v2533_v30  }
  0xb2   : > { %1005 = vrot.lane.b32.xlu0 %v2540_v33, %s2157_s25  ;;  %831 = vperm.xlu1 %1959, %v2543_v35  }
  0xb6   : > { %1321 = vperm.xlu0 %1961, %v2262_v3   ;;  %1960 = vset.pattern.permute.xlu1 %v3465_v1  ;;  %v504_v3 = vmul.f32 %v496_v17, %v2487_v56  ;;  %v2580_v56 = vsub.f32 %v2462_v32, %v2504_v24  ;;  %v352_v24 = vld [vmem:[%s329_s9] sm:$0xf] }
  0xb7   : > { %868 = vperm.xlu1 %1960, %v733_v40   ;;  %v1824_v63 = vadd.f32 -0.078125, %v352_v24  ;;  %v1393_v23 = vadd.f32 0.078125, %v352_v24 }
  0xb8   : > { %v536_v37 = vsub.f32 %v504_v3, %v528_v39 }
  0xb9   : > { %v2666_v48 = vrot.slane %v1824_v63, %v2316_v44  ;;  %v2669_v55 = vrot.slane %v1393_v23, %v2316_v44 }
  0xba   : > { %1333 = vperm.xlu0 %1961, %v2271_v9   ;;  %v541_v46 = vpack.c.bf16 %v537_v47, %v536_v37  ;;  %v740_v9 = vadd.f32 %v716_v50, %v2280_v15 }
  0xbb   : > { %876 = vperm.xlu1 %1960, %v2462_v32   ;;  %v732_v32 = vsub.f32 %v2280_v15, %v716_v50 }
  0xbc   : > { %1870 = vmatmul.mubr.bf16.vlgmr.msra.gmra.mxu1 %v541_v46 }
  0xbd   : > { %v2608_v42 = vsub.f32 %v740_v9, %v732_v32 }
  0xbe   : > { %1341 = vperm.xlu0 %1961, %v2277_v13   ;;  %v2573_v13 = vsub.f32 %v733_v40, %v2494_v60  ;;  %v2593_v60 = vsub.f32 %v2478_v62, %v2543_v35 }
  0xbf   : > { %880 = vperm.xlu1 %1960, %v2512_v26  }
  0xc2   : > { %928 = vperm.xlu0 %1961, %v2533_v30  }
  0xc3   : > { %888 = vperm.xlu1 %1960, %v2524_v19  }
  0xc6   : > { %936 = vperm.xlu0 %1961, %v2543_v35  }
  0xc7   : > { %896 = vperm.xlu1 %1960, %v740_v9  }
  0xca   : > { %1962 = vset.pattern.permute.xlu0 %v2153_v0 }
  0xcb   : > { %749 = vperm.xlu0 %1962, %v733_v40   ;;  %916 = vperm.xlu1 %1960, %v2501_v16  }
  0xcf   : > { %764 = vperm.xlu0 %1962, %v2512_v26   ;;  %924 = vperm.xlu1 %1960, %v2509_v25   ;;  %v741_v26 = vmul.f32 0.5, %v352_v24 }
  0xd1   : > { %v743_v30 = vrot.slane %v741_v26, 2 }
  0xd3   : > { %774 = vperm.xlu0 %1962, %v2524_v19   ;;  %995 = vrot.lane.b32.xlu1 %v2573_v13, %s2157_s25  ;;  %v2637_v52 = vadd.f32 %v743_v30, %v352_v24  ;;  %v2639_v53 = vsub.f32 %v352_v24, %v743_v30 }
  0xd5   : > { %v2647_v22 = vrot.slane %v2637_v52, %v2316_v44  ;;  %v2651_v57 = vrot.slane %v2639_v53, %v2316_v44  ;;  %v2679_v17 = vrot.slane %v2637_v52, %v901_v41  ;;  %v2682_v39 = vrot.slane %v2639_v53, %v901_v41 }
  0xd7   : > { %784 = vperm.xlu0 %1962, %v740_v9   ;;  %999 = vrot.lane.b32.xlu1 %v2580_v56, %s2157_s25  ;;  %v2706_v9 = vrot.slane %v1824_v63, %v901_v41 }
  0xdb   : > { %806 = vperm.xlu0 %1962, %v2501_v16   ;;  %1003 = vrot.lane.b32.xlu1 %v2586_v58, %s2157_s25 }
  0xdf   : > { %816 = vperm.xlu0 %1962, %v2509_v25   ;;  %1007 = vrot.lane.b32.xlu1 %v2593_v60, %s2157_s25 }
  0xe3   : > { %826 = vperm.xlu0 %1962, %v2521_v27   ;;  %1317 = vperm.xlu1 %1960, %v2260_v2  }
  0xe7   : > { %836 = vperm.xlu0 %1962, %v732_v32   ;;  %1325 = vperm.xlu1 %1960, %v2265_v5   ;;  %v2613_v5 = vpop.permute.xlu1 %1259 }
  0xe8   : > { %vm1293_vm9 = vcmp.gt.f32.partialorder %v2613_v5, %v2651_v57  ;;  %vm1301_vm10 = vcmp.lt.f32.partialorder %v2613_v5, %v2647_v22  ;;  %vm1386_vm11 = vcmp.gt.f32.partialorder %v2613_v5, %v2666_v48  ;;  %vm1399_vm12 = vcmp.lt.f32.partialorder %v2613_v5, %v2669_v55 }
  0xe9   : > { %vm1309_vm1 = vmand %vm1293_vm9, %vm1301_vm10  ;;  %vm2764_vm10 = vcmp.eq.s32.totalorder %v1466_v36, 1 }
  0xea   : > { %vm2730_vm2 = vmand %vm1386_vm11, %vm1399_vm12 }
  0xeb   : > { %1254 = vperm.xlu0 %1962, %v2260_v2   ;;  %1329 = vperm.xlu1 %1960, %v2268_v7   ;;  %v2617_v2 = vpop.permute.xlu1 %1264 }
  0xef   : > { %1269 = vperm.xlu0 %1962, %v2268_v7   ;;  %1337 = vperm.xlu1 %1960, %v2274_v11   ;;  %v2619_v7 = vpop.permute.xlu1 %1274 }
  0xf0   : > { %vm1296_vm13 = vcmp.gt.f32.partialorder %v2619_v7, %v2651_v57  ;;  %vm1304_vm14 = vcmp.lt.f32.partialorder %v2619_v7, %v2647_v22  ;;  %vm1389_vm15 = vcmp.gt.f32.partialorder %v2619_v7, %v2666_v48  ;;  %vm1402_vm0 = vcmp.lt.f32.partialorder %v2619_v7, %v2669_v55 }
  0xf1   : > { %vm2746_vm5 = vmand %vm1296_vm13, %vm1304_vm14 }
  0xf2   : > { %vm2760_vm9 = vmand %vm1389_vm15, %vm1402_vm0 }
  0xf3   : > { %1279 = vperm.xlu0 %1962, %v2274_v11   ;;  %1345 = vperm.xlu1 %1960, %v2280_v15   ;;  %v2621_v11 = vpop.permute.xlu1 %1284 }
  0xf4   : > { %vm1298_vm12 = vcmp.gt.f32.partialorder %v2621_v11, %v2651_v57  ;;  %vm1306_vm13 = vcmp.lt.f32.partialorder %v2621_v11, %v2647_v22 }
  0xf7   : > { %1009 = vrot.lane.b32.xlu0 %v2608_v42, %s2157_s25  ;;  %932 = vperm.xlu1 %1960, %v2521_v27   ;;  %s2045_s25 = scalar_lea.vmem %s3352_s14, 1024 }
  0xf8   : > { %p2046_p12 = scmp.ne.s32.totalorder %s3352_s14, %s2045_s25  ;;  %p2053_p2 = scmp.lt.s32.totalorder %s2051_s8, %s2045_s25 }
  0xfa   : > { %p2047_p13 = pnand %p2046_p12, %p2235_p4  ;;  %p2054_p3 = por %p2053_p2, %p2052_p1 }
  0xfb   : > { %1289 = vperm.xlu0 %1962, %v2280_v15   ;;  %940 = vperm.xlu1 %1960, %v732_v32   ;;  %v2708_v32 = vrot.slane %v1393_v23, %v901_v41 }
  0xfc   : > { %p2048_p0 = pneg %p2047_p13 }
  0xfe   : > { %p2055_p5 = pnand %p2054_p3, %p2048_p0 }
  0xff   : > { %1963 = vset.pattern.permute.xlu1 %v2153_v0 }
 0x111   : > { %v2627_v62 = vpop.permute.xlu1 %754  ;;  %v2629_v16 = vpop.permute.xlu0 %872 }
 0x115   : > { %v760_v15 = vpop.permute.xlu1 %759  ;;  %v2631_v25 = vpop.permute.xlu0 %884 }
 0x116   : > { %v793_v4 = vmin.f32 %v760_v15, %v2647_v22  ;;  %v1142_v10 = vmax.f32 %v760_v15, %v2647_v22  ;;  %v1176_v5 = vmax.f32 %v2631_v25, %v2679_v17 }
 0x119   : > { %v770_v27 = vpop.permute.xlu1 %769  ;;  %v2633_v19 = vpop.permute.xlu0 %892 }
 0x11a   : > { %v1144_v0 = vmax.f32 %v770_v27, %v2647_v22 }
 0x11d   : > { %v780_v35 = vpop.permute.xlu1 %779  ;;  %v2635_v12 = vpop.permute.xlu0 %912 }
 0x11e   : > { %v797_v37 = vmin.f32 %v780_v35, %v2647_v22  ;;  %v1146_v47 = vmax.f32 %v780_v35, %v2647_v22  ;;  %v947_v30 = vmax.f32 %v2635_v12, %v2682_v39  ;;  %v1180_v35 = vmin.f32 %v2635_v12, %v2682_v39 }
 0x121   : > { %v2641_v14 = vpop.permute.xlu1 %801  ;;  %v2643_v61 = vpop.permute.xlu0 %920 }
 0x122   : > { %v1182_v41 = vmin.f32 %v2643_v61, %v2682_v39 }
 0x125   : > { %v812_v6 = vpop.permute.xlu1 %811  ;;  %v998_v8 = vpop.permute.xlu0 %997 }
 0x126   : > { %v845_v40 = vmax.f32 %v812_v6, %v2651_v57  ;;  %v1150_v18 = vmin.f32 %v812_v6, %v2651_v57  ;;  %v1020_v28 = vmul.f32 %v998_v8, %v2515_v20  ;;  %v795_v20 = vmin.f32 %v770_v27, %v2647_v22 }
 0x127   : > { %v3491_v8 = vmov 0  ;;  %v3497_v27 = vmov 0 }
 0x128   : > { %v2661_v31 = vsub.f32 %v793_v4, %v845_v40  ;;  %v2663_v45 = vsub.f32 %v1142_v10, %v1150_v18  ;;  %1039 = vperm.xlu1 %1963, %v1020_v28   ;;  %v949_v18 = vmax.f32 %v2643_v61, %v2682_v39 }
 0x129   : > { %v822_v34 = vpop.permute.xlu1 %821  ;;  %v2671_v59 = vpop.permute.xlu0 %1001 }
 0x12a   : > { %v847_v43 = vmax.f32 %v822_v34, %v2651_v57  ;;  %v1152_v38 = vmin.f32 %v822_v34, %v2651_v57 }
 0x12c   : > { %v2684_v49 = vsub.f32 %v795_v20, %v847_v43  ;;  %v2686_v51 = vsub.f32 %v1144_v0, %v1152_v38  ;;  %v3466_v38 = vmov 0.0  }
 0x12d   : > { %v832_v3 = vpop.permute.xlu1 %831  ;;  %v2696_v54 = vpop.permute.xlu0 %1005 }
 0x12e   : > { %v849_v50 = vmax.f32 %v832_v3, %v2651_v57  ;;  %v1154_v46 = vmin.f32 %v832_v3, %v2651_v57 }
 0x130   : > { %v2714_v24 = vsub.f32 %v797_v37, %v849_v50  ;;  %v2716_v15 = vsub.f32 %v1146_v47, %v1154_v46  ;;  %v861_v47 = vmax.f32 %v2661_v31, 0.0  ;;  %v1166_v50 = vmax.f32 %v2663_v45, 0.0 }
 0x131   : > { %v1322_v26 = vpop.permute.xlu0 %1321  ;;  %v907_v31 = vmin.f32 %v2631_v25, %v2679_v17 }
 0x132   : > { %v869_v63 = vpop.permute.xlu1 %868  ;;  %vm1349_vm3 = vcmp.gt.f32.partialorder %v1322_v26, %v2682_v39  ;;  %vm1365_vm4 = vcmp.lt.f32.partialorder %v1322_v26, %v2679_v17  ;;  %vm1419_vm7 = vcmp.gt.f32.partialorder %v1322_v26, %v2706_v9  ;;  %vm1439_vm8 = vcmp.lt.f32.partialorder %v1322_v26, %v2708_v32 }
 0x133   : > { %v903_v23 = vmin.f32 %v869_v63, %v2679_v17  ;;  %v1172_v4 = vmax.f32 %v869_v63, %v2679_v17  ;;  %vm1357_vm6 = vmand %vm1309_vm1, %vm1349_vm3 }
 0x134   : > { %vm2768_vm11 = vmand %vm1357_vm6, %vm1365_vm4 }
 0x135   : > { %v3492_v8 = vsel %vm2768_vm11, 4294967295, %v3491_v8  ;;  %v2776_v10 = vsub.f32 %v903_v23, %v947_v30  ;;  %v2778_v7 = vsub.f32 %v1172_v4, %v1180_v35  ;;  %v1334_v40 = vpop.permute.xlu0 %1333  ;;  %vm1427_vm14 = vmand %vm2730_vm2, %vm1419_vm7  ;;  %v3499_v35 = vmov 0 }
 0x136   : > { %v877_v28 = vpop.permute.xlu1 %876  ;;  %vm2784_vm15 = vmand %vm1427_vm14, %vm1439_vm8  ;;  %vm1352_vm1 = vcmp.gt.f32.partialorder %v1334_v40, %v2682_v39  ;;  %vm1368_vm3 = vcmp.lt.f32.partialorder %v1334_v40, %v2679_v17  ;;  %vm1422_vm7 = vcmp.gt.f32.partialorder %v1334_v40, %v2706_v9 }
 0x137   : > { %v3494_v29 = vsel %vm2784_vm15, 4294967295, %v3493_v29  ;;  %v905_v34 = vmin.f32 %v877_v28, %v2679_v17  ;;  %v1174_v20 = vmax.f32 %v877_v28, %v2679_v17  ;;  %vm1477_vm0 = vmor %vm2768_vm11, %vm2784_vm15  ;;  %v909_v28 = vmin.f32 %v2633_v19, %v2679_v17 }
 0x138   : > { %vm1485_vm2 = vmand %vm1477_vm0, %vm2764_vm10 }
 0x139   : > { %vm2806_vm4 = vmand %vm1298_vm12, %vm1306_vm13  ;;  %v957_v0 = vsub.f32 %v905_v34, %v949_v18  ;;  %v1190_v43 = vsub.f32 %v1174_v20, %v1182_v41  ;;  %v1493_v36 = vsel %vm1485_vm2, 1.0, %v3466_v38  ;;  %v1342_v3 = vpop.permute.xlu0 %1341  ;;  %vm1442_vm12 = vcmp.lt.f32.partialorder %v1334_v40, %v2708_v32 }
 0x13a   : > { %1502 = vmax.xlane.f32.xlu0 %v1493_v36  ;;  %v2816_v37 = vpop.permute.xlu1 %880  ;;  %vm1360_vm8 = vmand %vm2746_vm5, %vm1352_vm1  ;;  %vm1424_vm13 = vcmp.gt.f32.partialorder %v1342_v3, %v2706_v9  ;;  %vm1444_vm14 = vcmp.lt.f32.partialorder %v1342_v3, %v2708_v32  ;;  %vm1391_vm5 = vcmp.gt.f32.partialorder %v2621_v11, %v2666_v48  ;;  %vm1404_vm1 = vcmp.lt.f32.partialorder %v2621_v11, %v2669_v55 }
 0x13b   : > { %v965_v46 = vmax.f32 %v957_v0, 0.0  ;;  %v1198_v26 = vmax.f32 %v1190_v43, 0.0  ;;  %vm2827_vm0 = vmand %vm1360_vm8, %vm1368_vm3  ;;  %vm1354_vm3 = vcmp.gt.f32.partialorder %v1342_v3, %v2682_v39  ;;  %v1178_v41 = vmax.f32 %v2633_v19, %v2679_v17 }
 0x13c   : > { %v3498_v27 = vsel %vm2827_vm0, 4294967295, %v3497_v27  ;;  %vm1430_vm2 = vmand %vm2760_vm9, %vm1422_vm7  ;;  %vm1370_vm7 = vcmp.lt.f32.partialorder %v1342_v3, %v2679_v17  ;;  %v863_v34 = vmax.f32 %v2684_v49, 0.0  ;;  %v1168_v11 = vmax.f32 %v2686_v51, 0.0 }
 0x13d   : > { %v2839_v45 = vmul.f32 %v1198_v26, %v1166_v50  ;;  %v929_v30 = vpop.permute.xlu0 %928  ;;  %vm2841_vm6 = vmand %vm1430_vm2, %vm1442_vm12  ;;  %v2845_v63 = vmul.f32 %v965_v46, %v861_v47  ;;  %v3505_v46 = vmov 0  ;;  %v865_v3 = vmax.f32 %v2714_v24, 0.0 }
 0x13e   : > { %v3500_v35 = vsel %vm2841_vm6, 4294967295, %v3499_v35  ;;  %v951_v23 = vmax.f32 %v929_v30, %v2682_v39  ;;  %v1184_v4 = vmin.f32 %v929_v30, %v2682_v39  ;;  %v2851_v12 = vpop.permute.xlu1 %888  ;;  %vm2862_vm8 = vmand %vm1391_vm5, %vm1404_vm1  ;;  %v1173_v30 = vmax.f32 %v2629_v16, %v2679_v17 }
 0x13f   : > { %vm1362_vm5 = vmand %vm2806_vm4, %vm1354_vm3  ;;  %v906_v38 = vmin.f32 %v2816_v37, %v2679_v17  ;;  %vm1294_vm3 = vcmp.gt.f32.partialorder %v2617_v2, %v2651_v57 }
 0x140   : > { %v959_v40 = vsub.f32 %v907_v31, %v951_v23  ;;  %v1192_v18 = vsub.f32 %v1176_v5, %v1184_v4  ;;  %vm2884_vm1 = vmand %vm1362_vm5, %vm1370_vm7  ;;  %v904_v31 = vmin.f32 %v2629_v16, %v2679_v17  ;;  %v843_v5 = vmax.f32 %v2641_v14, %v2651_v57 }
 0x141   : > { %v937_v20 = vpop.permute.xlu0 %936  ;;  %vm1432_vm2 = vmand %vm2862_vm8, %vm1424_vm13  ;;  %v1148_v23 = vmin.f32 %v2641_v14, %v2651_v57  ;;  %v1170_v4 = vmax.f32 %v2716_v15, 0.0  ;;  %vm1302_vm7 = vcmp.lt.f32.partialorder %v2617_v2, %v2647_v22  ;;  %vm1387_vm8 = vcmp.gt.f32.partialorder %v2617_v2, %v2666_v48 }
 0x142   : > { %v967_v0 = vmax.f32 %v959_v40, 0.0  ;;  %v1200_v43 = vmax.f32 %v1192_v18, 0.0  ;;  %v953_v36 = vmax.f32 %v937_v20, %v2682_v39  ;;  %v1186_v47 = vmin.f32 %v937_v20, %v2682_v39  ;;  %v2880_v50 = vpop.permute.xlu1 %896  ;;  %vm2896_vm4 = vmand %vm1432_vm2, %vm1444_vm14 }
 0x143   : > { %v3506_v46 = vsel %vm2896_vm4, 4294967295, %v3505_v46  ;;  %vm1400_vm5 = vcmp.lt.f32.partialorder %v2617_v2, %v2669_v55  ;;  %vm1310_vm2 = vmand %vm1294_vm3, %vm1302_vm7  ;;  %v3509_v2 = vmov 0 }
 0x144   : > { %v2892_v49 = vmul.f32 %v1200_v43, %v1168_v11  ;;  %v961_v51 = vsub.f32 %v909_v28, %v953_v36  ;;  %v1194_v61 = vsub.f32 %v1178_v41, %v1186_v47  ;;  %v2900_v26 = vmul.f32 %v967_v0, %v863_v34  ;;  %vm1408_vm14 = vmand %vm1387_vm8, %vm1400_vm5 }
 0x146   : > { %v969_v25 = vmax.f32 %v961_v51, 0.0  ;;  %v1202_v40 = vmax.f32 %v1194_v61, 0.0  ;;  %v917_v18 = vpop.permute.xlu1 %916  ;;  %v750_v28 = vpop.permute.xlu0 %749  ;;  %v963_v51 = vmax.f32 %v2776_v10, 0.0  ;;  %v1196_v61 = vmax.f32 %v2778_v7, 0.0 }
 0x147   : > { %v948_v16 = vmax.f32 %v917_v18, %v2682_v39  ;;  %v1181_v14 = vmin.f32 %v917_v18, %v2682_v39  ;;  %v791_v41 = vmin.f32 %v750_v28, %v2647_v22  ;;  %v1140_v34 = vmax.f32 %v750_v28, %v2647_v22 }
 0x148   : > { %v2924_v24 = vmul.f32 %v1202_v40, %v1170_v4  ;;  %v2926_v15 = vmul.f32 %v969_v25, %v865_v3  ;;  %v1175_v4 = vmax.f32 %v2816_v37, %v2679_v17  ;;  %v792_v37 = vmin.f32 %v2627_v62, %v2647_v22 }
 0x149   : > { %v956_v11 = vsub.f32 %v904_v31, %v948_v16  ;;  %v1189_v20 = vsub.f32 %v1173_v30, %v1181_v14  ;;  %v851_v0 = vsub.f32 %v791_v41, %v843_v5  ;;  %v1156_v43 = vsub.f32 %v1140_v34, %v1148_v23 }
 0x14a   : > { %v925_v36 = vpop.permute.xlu1 %924  ;;  %v765_v47 = vpop.permute.xlu0 %764  ;;  %v1141_v34 = vmax.f32 %v2627_v62, %v2647_v22 }
 0x14b   : > { %v859_v1 = vmax.f32 %v851_v0, 0.0  ;;  %v1164_v18 = vmax.f32 %v1156_v43, 0.0  ;;  %v950_v3 = vmax.f32 %v925_v36, %v2682_v39  ;;  %v1183_v31 = vmin.f32 %v925_v36, %v2682_v39 }
 0x14d   : > { %v2936_v30 = vmul.f32 %v1196_v61, %v1164_v18  ;;  %v2938_v5 = vmul.f32 %v963_v51, %v859_v1  ;;  %v958_v23 = vsub.f32 %v906_v38, %v950_v3  ;;  %v1191_v10 = vsub.f32 %v1175_v4, %v1183_v31 }
 0x14e   : > { %v2940_v25 = vpop.permute.xlu1 %995  ;;  %v775_v7 = vpop.permute.xlu0 %774  ;;  %v964_v51 = vmax.f32 %v956_v11, 0.0  ;;  %v794_v61 = vmin.f32 %v765_v47, %v2647_v22 }
 0x152   : > { %v1000_v40 = vpop.permute.xlu1 %999  ;;  %v785_v28 = vpop.permute.xlu0 %784 }
 0x153   : > { %v1021_v16 = vmul.f32 %v1000_v40, %v2580_v56  ;;  %v1197_v56 = vmax.f32 %v1189_v20, 0.0  ;;  %v796_v20 = vmin.f32 %v775_v7, %v2647_v22 }
 0x155   : > { %1044 = vperm.xlu1 %1963, %v1021_v16  }
 0x156   : > { %v1004_v14 = vpop.permute.xlu1 %1003  ;;  %v807_v41 = vpop.permute.xlu0 %806 }
 0x157   : > { %v1023_v1 = vmul.f32 %v1004_v14, %v2586_v58  ;;  %v844_v38 = vmax.f32 %v807_v41, %v2651_v57  ;;  %v1149_v0 = vmin.f32 %v807_v41, %v2651_v57  ;;  %v1143_v58 = vmax.f32 %v765_v47, %v2647_v22 }
 0x159   : > { %v852_v43 = vsub.f32 %v792_v37, %v844_v38  ;;  %v1157_v36 = vsub.f32 %v1141_v34, %v1149_v0  ;;  %1054 = vperm.xlu1 %1963, %v1023_v1   ;;  %v1145_v1 = vmax.f32 %v775_v7, %v2647_v22 }
 0x15a   : > { %v1008_v18 = vpop.permute.xlu1 %1007  ;;  %v817_v4 = vpop.permute.xlu0 %816 }
 0x15b   : > { %v860_v3 = vmax.f32 %v852_v43, 0.0  ;;  %v1165_v31 = vmax.f32 %v1157_v36, 0.0  ;;  %v1025_v40 = vmul.f32 %v1008_v18, %v2593_v60  ;;  %v846_v62 = vmax.f32 %v817_v4, %v2651_v57 }
 0x15c   : > { %v1151_v16 = vmin.f32 %v817_v4, %v2651_v57  ;;  %v966_v43 = vmax.f32 %v958_v23, 0.0  ;;  %v1199_v36 = vmax.f32 %v1191_v10, 0.0  ;;  %v798_v23 = vmin.f32 %v785_v28, %v2647_v22 }
 0x15d   : > { %v2955_v14 = vmul.f32 %v1197_v56, %v1165_v31  ;;  %v854_v37 = vsub.f32 %v794_v61, %v846_v62  ;;  %1064 = vperm.xlu1 %1963, %v1025_v40   ;;  %v2957_v11 = vmul.f32 %v964_v51, %v860_v3  ;;  %v1147_v10 = vmax.f32 %v785_v28, %v2647_v22 }
 0x15e   : > { %v1159_v41 = vsub.f32 %v1143_v58, %v1151_v16  ;;  %v1318_v34 = vpop.permute.xlu1 %1317  ;;  %v827_v60 = vpop.permute.xlu0 %826 }
 0x15f   : > { %v862_v38 = vmax.f32 %v854_v37, 0.0  ;;  %v848_v47 = vmax.f32 %v827_v60, %v2651_v57  ;;  %v1153_v0 = vmin.f32 %v827_v60, %v2651_v57  ;;  %v3514_v60 = vmov 0.0  }
 0x160   : > { %v1167_v51 = vmax.f32 %v1159_v41, 0.0 }
 0x161   : > { %v2971_v56 = vsub.f32 %v796_v20, %v848_v47  ;;  %v2973_v7 = vsub.f32 %v1145_v1, %v1153_v0  ;;  %v2977_v3 = vmul.f32 %v966_v43, %v862_v38  ;;  %v3515_v47 = vmov 0 }
 0x162   : > { %v2975_v61 = vmul.f32 %v1199_v36, %v1167_v51  ;;  %v1326_v18 = vpop.permute.xlu1 %1325  ;;  %v837_v4 = vpop.permute.xlu0 %836  ;;  %v3517_v51 = vmov 0 }
 0x163   : > { %v850_v31 = vmax.f32 %v837_v4, %v2651_v57  ;;  %v1155_v40 = vmin.f32 %v837_v4, %v2651_v57  ;;  %vm1350_vm13 = vcmp.gt.f32.partialorder %v1326_v18, %v2682_v39  ;;  %vm1366_vm12 = vcmp.lt.f32.partialorder %v1326_v18, %v2679_v17 }
 0x164   : > { %vm1420_vm9 = vcmp.gt.f32.partialorder %v1326_v18, %v2706_v9  ;;  %vm1358_vm15 = vmand %vm1310_vm2, %vm1350_vm13  ;;  %vm1440_vm11 = vcmp.lt.f32.partialorder %v1326_v18, %v2708_v32  ;;  %v908_v18 = vmin.f32 %v2851_v12, %v2679_v17  ;;  %v1177_v4 = vmax.f32 %v2851_v12, %v2679_v17 }
 0x165   : > { %v2995_v28 = vsub.f32 %v798_v23, %v850_v31  ;;  %v2997_v62 = vsub.f32 %v1147_v10, %v1155_v40  ;;  %vm3002_vm3 = vmand %vm1358_vm15, %vm1366_vm12  ;;  %v1179_v31 = vmax.f32 %v2880_v50, %v2679_v17  ;;  %v864_v12 = vmax.f32 %v2971_v56, 0.0 }
 0x166   : > { %v3000_v58 = vpop.permute.xlu1 %1329  ;;  %v1255_v37 = vpop.permute.xlu0 %1254  ;;  %vm1428_vm7 = vmand %vm1408_vm14, %vm1420_vm9  ;;  %v1169_v41 = vmax.f32 %v2973_v7, 0.0 }
 0x167   : > { %vm3006_vm4 = vmand %vm1428_vm7, %vm1440_vm11  ;;  %vm1292_vm13 = vcmp.gt.f32.partialorder %v1255_v37, %v2651_v57  ;;  %vm1300_vm5 = vcmp.lt.f32.partialorder %v1255_v37, %v2647_v22  ;;  %vm1385_vm14 = vcmp.gt.f32.partialorder %v1255_v37, %v2666_v48  ;;  %vm1398_vm2 = vcmp.lt.f32.partialorder %v1255_v37, %v2669_v55 }
 0x168   : > { %v3510_v2 = vsel %vm3006_vm4, 4294967295, %v3509_v2  ;;  %vm3511_vm11 = vmor %vm2827_vm0, %vm2841_vm6  ;;  %vm1364_vm6 = vcmp.lt.f32.partialorder %v1318_v34, %v2679_v17 }
 0x169   : > { %vm3025_vm15 = vmand %vm3511_vm11, %vm2764_vm10  ;;  %vm1348_vm11 = vcmp.gt.f32.partialorder %v1318_v34, %v2682_v39 }
 0x16a   : > { %v3016_v20 = vpop.permute.xlu1 %1337  ;;  %vm1478_vm9 = vmor %vm3002_vm3, %vm3006_vm4  ;;  %vm1418_vm4 = vcmp.gt.f32.partialorder %v1318_v34, %v2706_v9  ;;  %v1270_v0 = vpop.permute.xlu0 %1269  ;;  %v1496_v43 = vsel %vm3025_vm15, 1.0, %v3514_v60 }
 0x16b   : > { %vm1486_vm12 = vmand %vm1478_vm9, %vm2764_vm10 }
 0x16c   : > { %v1494_v1 = vsel %vm1486_vm12, 1.0, %v3514_v60  ;;  %vm1308_vm7 = vmand %vm1292_vm13, %vm1300_vm5  ;;  %vm1438_vm5 = vcmp.lt.f32.partialorder %v1318_v34, %v2708_v32  ;;  %v910_v34 = vmin.f32 %v2880_v50, %v2679_v17 }
 0x16d   : > { %1504 = vmax.xlane.f32.xlu0 %v1494_v1  ;;  %vm1356_vm8 = vmand %vm1308_vm7, %vm1348_vm11  ;;  %vm1351_vm11 = vcmp.gt.f32.partialorder %v3000_v58, %v2682_v39 }
 0x16e   : > { %v3039_v38 = vpop.permute.xlu1 %1345  ;;  %vm3042_vm0 = vmand %vm1356_vm8, %vm1364_vm6  ;;  %vm1303_vm8 = vcmp.lt.f32.partialorder %v1270_v0, %v2647_v22 }
 0x16f   : > { %v3516_v47 = vsel %vm3042_vm0, 4294967295, %v3515_v47  ;;  %vm1406_vm9 = vmand %vm1385_vm14, %vm1398_vm2  ;;  %vm1388_vm14 = vcmp.gt.f32.partialorder %v1270_v0, %v2666_v48  ;;  %vm1401_vm2 = vcmp.lt.f32.partialorder %v1270_v0, %v2669_v55 }
 0x170   : > { %vm1426_vm13 = vmand %vm1406_vm9, %vm1418_vm4  ;;  %vm1295_vm4 = vcmp.gt.f32.partialorder %v1270_v0, %v2651_v57 }
 0x171   : > { %1508 = vmax.xlane.f32.xlu0 %v1496_v43  ;;  %vm3051_vm12 = vmand %vm1426_vm13, %vm1438_vm5  ;;  %vm1367_vm5 = vcmp.lt.f32.partialorder %v3000_v58, %v2679_v17 }
 0x172   : > { %v933_v36 = vpop.permute.xlu1 %932  ;;  %v3518_v51 = vsel %vm3051_vm12, 4294967295, %v3517_v51  ;;  %vm1476_vm6 = vmor %vm3042_vm0, %vm3051_vm12  ;;  %vm1353_vm12 = vcmp.gt.f32.partialorder %v3016_v20, %v2682_v39 }
 0x173   : > { %v952_v23 = vmax.f32 %v933_v36, %v2682_v39  ;;  %v1185_v10 = vmin.f32 %v933_v36, %v2682_v39  ;;  %vm3081_vm7 = vmand %vm1476_vm6, %vm2764_vm10 }
 0x174   : > { %vm1311_vm9 = vmand %vm1295_vm4, %vm1303_vm8  ;;  %vm1421_vm8 = vcmp.gt.f32.partialorder %v3000_v58, %v2706_v9 }
 0x175   : > { %v960_v40 = vsub.f32 %v908_v18, %v952_v23  ;;  %v1193_v37 = vsub.f32 %v1177_v4, %v1185_v10  ;;  %v1280_v18 = vpop.permute.xlu0 %1279  ;;  %vm1359_vm13 = vmand %vm1311_vm9, %vm1351_vm11  ;;  %vm1441_vm9 = vcmp.lt.f32.partialorder %v3000_v58, %v2708_v32  ;;  %v1492_v58 = vsel %vm3081_vm7, 1.0, %v3514_v60 }
 0x176   : > { %v941_v1 = vpop.permute.xlu1 %940  ;;  %vm3097_vm6 = vmand %vm1359_vm13, %vm1367_vm5  ;;  %vm1305_vm5 = vcmp.lt.f32.partialorder %v1280_v18, %v2647_v22 }
 0x177   : > { %v968_v56 = vmax.f32 %v960_v40, 0.0  ;;  %v1201_v43 = vmax.f32 %v1193_v37, 0.0  ;;  %v954_v36 = vmax.f32 %v941_v1, %v2682_v39  ;;  %v1187_v7 = vmin.f32 %v941_v1, %v2682_v39  ;;  %vm1409_vm4 = vmand %vm1388_vm14, %vm1401_vm2 }
 0x178   : > { %v866_v1 = vmax.f32 %v2995_v28, 0.0  ;;  %vm1429_vm11 = vmand %vm1409_vm4, %vm1421_vm8  ;;  %vm1297_vm2 = vcmp.gt.f32.partialorder %v1280_v18, %v2651_v57  ;;  %vm1369_vm4 = vcmp.lt.f32.partialorder %v3016_v20, %v2679_v17 }
 0x179   : > { %v3095_v4 = vmul.f32 %v1201_v43, %v1169_v41  ;;  %v962_v23 = vsub.f32 %v910_v34, %v954_v36  ;;  %v1195_v10 = vsub.f32 %v1179_v31, %v1187_v7  ;;  %v3101_v37 = vmul.f32 %v968_v56, %v864_v12  ;;  %vm3113_vm13 = vmand %vm1429_vm11, %vm1441_vm9 }
 0x17a   : > { %v1171_v41 = vmax.f32 %v2997_v62, 0.0  ;;  %v3523_v12 = vmov 0  ;;  %vm1479_vm14 = vmor %vm3097_vm6, %vm3113_vm13  ;;  %v1010_v62 = vpop.permute.xlu0 %1009  ;;  %vm1390_vm11 = vcmp.gt.f32.partialorder %v1280_v18, %v2666_v48  ;;  %vm1403_vm9 = vcmp.lt.f32.partialorder %v1280_v18, %v2669_v55 }
 0x17b   : > { %v970_v34 = vmax.f32 %v962_v23, 0.0  ;;  %v1203_v31 = vmax.f32 %v1195_v10, 0.0  ;;  %v3524_v12 = vsel %vm3113_vm13, 4294967295, %v3523_v12  ;;  %vm1487_vm8 = vmand %vm1479_vm14, %vm2764_vm10  ;;  %vm1423_vm14 = vcmp.gt.f32.partialorder %v3016_v20, %v2706_v9 }
 0x17c   : > { %vm1313_vm15 = vmand %vm1297_vm2, %vm1305_vm5  ;;  %v1495_v43 = vsel %vm1487_vm8, 1.0, %v3514_v60  ;;  %vm1443_vm5 = vcmp.lt.f32.partialorder %v3016_v20, %v2708_v32  ;;  %v1019_v36 = vmul.f32 %v2940_v25, %v2573_v13  ;;  %v3527_v7 = vmov 0 }
 0x17d   : > { %v3117_v28 = vmul.f32 %v1203_v31, %v1171_v41  ;;  %v3123_v0 = vmul.f32 %v970_v34, %v866_v1  ;;  %vm1361_vm0 = vmand %vm1313_vm15, %vm1353_vm12  ;;  %v1022_v13 = vmul.f32 %v2671_v59, %v2528_v21  ;;  %v1024_v21 = vmul.f32 %v2696_v54, %v2540_v33 }
 0x17e   : > { %vm3142_vm13 = vmand %vm1361_vm0, %vm1369_vm4  ;;  %v1290_v50 = vpop.permute.xlu0 %1289 }
 0x17f   : > { %vm1411_vm7 = vmand %vm1390_vm11, %vm1403_vm9  ;;  %vm1299_vm0 = vcmp.gt.f32.partialorder %v1290_v50, %v2651_v57  ;;  %vm1307_vm15 = vcmp.lt.f32.partialorder %v1290_v50, %v2647_v22  ;;  %vm1392_vm9 = vcmp.gt.f32.partialorder %v1290_v50, %v2666_v48  ;;  %v1026_v48 = vmul.f32 %v1010_v62, %v2608_v42 }
 0x180   : > { %vm1431_vm2 = vmand %vm1411_vm7, %vm1423_vm14  ;;  %vm1405_vm7 = vcmp.lt.f32.partialorder %v1290_v50, %v2669_v55  ;;  %v1027_v55 = vsub.f32 %v2637_v52, %v2639_v53 }
 0x181   : > { %1500 = vmax.xlane.f32.xlu1 %v1492_v58  ;;  %vm3153_vm12 = vmand %vm1431_vm2, %vm1443_vm5  ;;  %vm1355_vm2 = vcmp.gt.f32.partialorder %v3039_v38, %v2682_v39  ;;  %v1213_v39 = vmax.f32 %v2955_v14, 1e-09  ;;  %v3221_v14 = vpop.f32.mrf.mxu0 }
 0x182   : > { %v3528_v7 = vsel %vm3153_vm12, 4294967295, %v3527_v7  ;;  %vm1481_vm4 = vmor %vm3142_vm13, %vm3153_vm12  ;;  %vm1425_vm12 = vcmp.gt.f32.partialorder %v3039_v38, %v2706_v9  ;;  %v1029_v59 = vrot.slane %v1027_v55, 1 }
 0x183   : > { %vm1489_vm8 = vmand %vm1481_vm4, %vm2764_vm10  ;;  %vm1371_vm4 = vcmp.lt.f32.partialorder %v3039_v38, %v2679_v17  ;;  %v3533_v17 = vmov 1   ;;  %2013 = vrcp.f32 %v1213_v39  ;;  %v3226_v1 = vpop.f32.mrf.mxu0 }
 0x184   : > { %v1497_v20 = vsel %vm1489_vm8, 1.0, %v3514_v60  ;;  %vm1315_vm14 = vmand %vm1299_vm0, %vm1307_vm15  ;;  %vm1445_vm15 = vcmp.lt.f32.partialorder %v3039_v38, %v2708_v32  ;;  %v1031_v54 = vmul.f32 %v1029_v59, %v1027_v55 }
 0x185   : > { %1506 = vmax.xlane.f32.xlu1 %v1495_v43  ;;  %vm1363_vm5 = vmand %vm1315_vm14, %vm1355_vm2  ;;  %v3229_v31 = vpop.f32.mrf.mxu0 }
 0x186   : > { %vm3178_vm8 = vmand %vm1363_vm5, %vm1371_vm4  ;;  %v3209_v42 = vrot.slane %v1031_v54, %v2316_v44  ;;  %vm3536_vm4 = vnez %v3492_v8  ;;  %v1216_v8 = vmax.f32 %v2892_v49, 1e-09 }
 0x187   : > { %1034 = vperm.xlu0 %1962, %v1019_v36   ;;  %vm1413_vm11 = vmand %vm1392_vm9, %vm1405_vm7 }
 0x188   : > { %vm1433_vm0 = vmand %vm1413_vm11, %vm1425_vm12  ;;  %vm3534_vm11 = vnez %v3506_v46  ;;  %v1215_v46 = vmax.f32 %v2975_v61, 1e-09 }
 0x189   : > { %1510 = vmax.xlane.f32.xlu1 %v1497_v20  ;;  %vm3188_vm14 = vmand %vm1433_vm0, %vm1445_vm15  ;;  %vm3537_vm0 = vnez %v3494_v29  ;;  %v2159_v20 = vmov 100.0   ;;  %v1218_v29 = vmax.f32 %v2924_v24, 1e-09 }
 0x18a   : > { %vm1483_vm9 = vmor %vm3178_vm8, %vm3188_vm14 }
 0x18b   : > { %1049 = vperm.xlu0 %1962, %v1022_v13   ;;  %vm1491_vm7 = vmand %vm1483_vm9, %vm2764_vm10 }
 0x18c   : > { %v1499_v33 = vsel %vm1491_vm7, 1.0, %v3514_v60  ;;  %vm1461_vm12 = vmand %vm3178_vm8, %vm3188_vm14 }
 0x18d   : > { %1514 = vmax.xlane.f32.xlu1 %v1499_v33  ;;  %vm3535_vm2 = vmor %vm2884_vm1, %vm3534_vm11 }
 0x18e   : > { %vm1490_vm5 = vmand %vm3535_vm2, %vm2764_vm10  ;;  %vm3539_vm2 = vnez %v3510_v2 }
 0x18f   : > { %1059 = vperm.xlu0 %1962, %v1024_v21   ;;  %v1498_v44 = vsel %vm1490_vm5, 1.0, %v3514_v60  ;;  %v656_v60 = vpop.f32.mrf.mxu0  ;;  %vm3538_vm15 = vmand %vm3536_vm4, %vm3537_vm0  ;;  %v1214_v21 = vmax.f32 %v2839_v45, 1e-09  ;;  %vm3542_vm0 = vnez %v3500_v35 }
 0x190   : > { %v2014_v52 = vpop.eup %2013  ;;  %vm1469_vm9 = vmand %vm3538_vm15, %vm2764_vm10 }
 0x191   : > { %vm3540_vm5 = vmand %vm3002_vm3, %vm3539_vm2  ;;  %vm3541_vm3 = vnez %v3498_v27 }
 0x192   : > { %vm1470_vm4 = vmand %vm3540_vm5, %vm2764_vm10 }
 0x193   : > { %1069 = vperm.xlu0 %1962, %v1026_v48   ;;  %v2160_v48 = vmov 10000.0   ;;  %vm3543_vm15 = vmand %vm3541_vm3, %vm3542_vm0 }
 0x197   : > { %1964 = vset.pattern.permute.xlu0 %v3533_v17 }
 0x1a3   : > { %v1040_v9 = vpop.permute.xlu1 %1039 }
 0x1a4   : > { %v1077_v32 = vadd.f32 %v3209_v42, %v1040_v9 }
 0x1a6   : > { %v1085_v25 = vsub.f32 %v1077_v32, %v2957_v11 }
 0x1a8   : > { %v1093_v38 = vmax.f32 %v1085_v25, 1e-09 }
 0x1aa   : > { %2015 = vrcp.f32 %v1093_v38  ;;  %v1221_v18 = vsub.f32 %v1213_v39, %v1093_v38 }
 0x1ab   : > { %2017 = vrcp.f32 %v1214_v21 }
 0x1ac   : > { %v1237_v53 = vmul.f32 %v2014_v52, %v1221_v18  ;;  %2019 = vrcp.f32 %v1216_v8 }
 0x1ad   : > { %2021 = vrcp.f32 %v1218_v29 }
 0x1b2   : > { %1512 = vmax.xlane.f32.xlu0 %v1498_v44 }
 0x1b7   : > { %v2016_v23 = vpop.eup %2015 }
 0x1b8   : > { %v1109_v10 = vmul.f32 %v2016_v23, %v1093_v38  ;;  %v2018_v38 = vpop.eup %2017 }
 0x1ba   : > { %v1117_v41 = vsub.f32 2.0, %v1109_v10 }
 0x1bc   : > { %v1125_v34 = vmul.f32 %v2016_v23, %v1117_v41  ;;  %v2020_v23 = vpop.eup %2019 }
 0x1be   : > { %v1133_v62 = vmul.f32 %v1125_v34, %v2957_v11  ;;  %v1541_v11 = vsel %vm1469_vm9, 0.0, %v2159_v20  ;;  %vm1472_vm9 = vmand %vm3543_vm15, %vm2764_vm10 }
 0x1c0   : > { %v1245_v58 = vsub.f32 %v1133_v62, %v1237_v53  ;;  %1581 = vst [vmem:[%s3232_s11 + $0x8] sm:$0xff] %v1133_v62  ;;  %v2022_v62 = vpop.eup %2021 }
 0x1c2   : > { %v1525_v50 = vmul.f32 3.0, %v1245_v58 }
 0x1c3   : > { %v1503_v43 = vpop.xlane.xlu0 %1502 }
 0x1c4   : > { %vm1517_vm7 = vcmp.gt.f32.partialorder %v1503_v43, 0.0  ;;  %v1533_v36 = vsub.f32 %v656_v60, %v1525_v50 }
 0x1c5   : > { %v1557_v33 = vsel %vm1517_vm7, 0.0, %v2160_v48  ;;  %vm3544_vm7 = vmand %vm2884_vm1, %vm3534_vm11  ;;  %vm3545_vm1 = vnez %v3516_v47  ;;  %vm3546_vm11 = vnez %v3518_v51 }
 0x1c6   : > { %v1549_v13 = vadd.f32 %v1541_v11, %v1533_v36  ;;  %vm1474_vm2 = vmand %vm3544_vm7, %vm2764_vm10 }
 0x1c7   : > { %vm3547_vm3 = vmand %vm3545_vm1, %vm3546_vm11 }
 0x1c8   : > { %v1565_v55 = vadd.f32 %v1557_v33, %v1549_v13  ;;  %vm1468_vm0 = vmand %vm3547_vm3, %vm2764_vm10 }
 0x1c9   : > { %v1540_v47 = vsel %vm1468_vm0, 0.0, %v2159_v20 }
 0x1ca   : > { %1573 = vst [vmem:[%s3245_s12 + $0x8] sm:$0xff] %v1565_v55 }
 0x1d0   : > { %v1045_v59 = vpop.permute.xlu1 %1044 }
 0x1d1   : > { %v1078_v17 = vadd.f32 %v3209_v42, %v1045_v59 }
 0x1d3   : > { %v1086_v45 = vsub.f32 %v1078_v17, %v2845_v63 }
 0x1d4   : > { %v1055_v39 = vpop.permute.xlu1 %1054 }
 0x1d5   : > { %v1094_v54 = vmax.f32 %v1086_v45, 1e-09  ;;  %v1080_v9 = vadd.f32 %v3209_v42, %v1055_v39  ;;  %v1871_v45 = vpop.f32.mrf.mxu1 }
 0x1d7   : > { %2023 = vrcp.f32 %v1094_v54  ;;  %v1222_v32 = vsub.f32 %v1214_v21, %v1094_v54  ;;  %v1088_v25 = vsub.f32 %v1080_v9, %v2900_v26 }
 0x1d8   : > { %v1065_v18 = vpop.permute.xlu1 %1064 }
 0x1d9   : > { %v1238_v49 = vmul.f32 %v2018_v38, %v1222_v32  ;;  %v1096_v52 = vmax.f32 %v1088_v25, 1e-09  ;;  %v1082_v24 = vadd.f32 %v3209_v42, %v1065_v18  ;;  %v1542_v25 = vsel %vm1470_vm4, 0.0, %v2159_v20  ;;  %v669_v38 = vpop.f32.mrf.mxu1 }
 0x1db   : > { %2025 = vrcp.f32 %v1096_v52  ;;  %v1090_v53 = vsub.f32 %v1082_v24, %v2926_v15  ;;  %v1224_v44 = vsub.f32 %v1216_v8, %v1096_v52  ;;  %v3320_v51 = vpop.f32.mrf.mxu1 }
 0x1dd   : > { %v1098_v10 = vmax.f32 %v1090_v53, 1e-09  ;;  %v1240_v41 = vmul.f32 %v2020_v23, %v1224_v44  ;;  %v1212_v53 = vmax.f32 %v2936_v30, 1e-09  ;;  %v1546_v23 = vsel %vm1474_vm2, 0.0, %v2159_v20 }
 0x1df   : > { %2027 = vrcp.f32 %v1098_v10  ;;  %v1226_v34 = vsub.f32 %v1218_v29, %v1098_v10 }
 0x1e0   : > { %2029 = vrcp.f32 %v1212_v53 }
 0x1e1   : > { %v1242_v58 = vmul.f32 %v2022_v62, %v1226_v34  ;;  %2031 = vrcp.f32 %v1215_v46  ;;  %v1217_v62 = vmax.f32 %v3095_v4, 1e-09 }
 0x1e3   : > { %2033 = vrcp.f32 %v1217_v62 }
 0x1e4   : > { %v2024_v60 = vpop.eup %2023 }
 0x1e5   : > { %v1110_v50 = vmul.f32 %v2024_v60, %v1094_v54 }
 0x1e7   : > { %v1118_v43 = vsub.f32 2.0, %v1110_v50 }
 0x1e8   : > { %v2026_v36 = vpop.eup %2025 }
 0x1e9   : > { %v1126_v11 = vmul.f32 %v2024_v60, %v1118_v43  ;;  %v1112_v13 = vmul.f32 %v2026_v36, %v1096_v52  ;;  %v1219_v60 = vmax.f32 %v3117_v28, 1e-09 }
 0x1eb   : > { %v1134_v21 = vmul.f32 %v1126_v11, %v2845_v63  ;;  %v1120_v33 = vsub.f32 2.0, %v1112_v13  ;;  %2035 = vrcp.f32 %v1219_v60 }
 0x1ec   : > { %v2028_v55 = vpop.eup %2027 }
 0x1ed   : > { %v1246_v8 = vsub.f32 %v1134_v21, %v1238_v49  ;;  %1582 = vst [vmem:[%s3232_s11 + $0x10] sm:$0xff] %v1134_v21  ;;  %v1114_v59 = vmul.f32 %v2028_v55, %v1098_v10  ;;  %v1128_v17 = vmul.f32 %v2026_v36, %v1120_v33  ;;  %v1544_v49 = vsel %vm1472_vm9, 0.0, %v2159_v20  ;;  %v2030_v21 = vpop.eup %2029 }
 0x1ee   : > { %vm3548_vm9 = vnez %v3524_v12 }
 0x1ef   : > { %v1122_v29 = vsub.f32 2.0, %v1114_v59  ;;  %v1526_v39 = vmul.f32 3.0, %v1246_v8  ;;  %v1136_v63 = vmul.f32 %v1128_v17, %v2900_v26  ;;  %v2032_v17 = vpop.eup %2031  ;;  %vm3549_vm7 = vmand %vm3097_vm6, %vm3548_vm9  ;;  %vm3550_vm6 = vnez %v3528_v7 }
 0x1f0   : > { %vm1471_vm2 = vmand %vm3549_vm7, %vm2764_vm10 }
 0x1f1   : > { %v1534_v54 = vsub.f32 %v3221_v14, %v1526_v39  ;;  %v1130_v9 = vmul.f32 %v2028_v55, %v1122_v29  ;;  %v1248_v32 = vsub.f32 %v1136_v63, %v1240_v41  ;;  %1584 = vst [vmem:[%s3232_s11 + $0x20] sm:$0xff] %v1136_v63 }
 0x1f3   : > { %v1550_v18 = vadd.f32 %v1542_v25, %v1534_v54  ;;  %v1138_v16 = vmul.f32 %v1130_v9, %v2926_v15  ;;  %v1528_v26 = vmul.f32 3.0, %v1248_v32  ;;  %v2034_v32 = vpop.eup %2033 }
 0x1f5   : > { %v1250_v2 = vsub.f32 %v1138_v16, %v1242_v58  ;;  %1586 = vst [vmem:[%s3232_s11 + $0x30] sm:$0xff] %v1138_v16  ;;  %v1536_v14 = vsub.f32 %v669_v38, %v1528_v26 }
 0x1f6   : > { %v1505_v52 = vpop.xlane.xlu0 %1504 }
 0x1f7   : > { %v1530_v27 = vmul.f32 3.0, %v1250_v2  ;;  %v1552_v35 = vadd.f32 %v1544_v49, %v1536_v14  ;;  %vm1518_vm5 = vcmp.gt.f32.partialorder %v1505_v52, 0.0 }
 0x1f8   : > { %v1558_v15 = vsel %vm1518_vm5, 0.0, %v2160_v48 }
 0x1f9   : > { %v1538_v24 = vsub.f32 %v1871_v45, %v1530_v27  ;;  %v1566_v44 = vadd.f32 %v1558_v15, %v1550_v18  ;;  %v2036_v18 = vpop.eup %2035 }
 0x1fa   : > { %v1509_v41 = vpop.xlane.xlu0 %1508 }
 0x1fb   : > { %v3289_v10 = vadd.f32 %v1546_v23, %v1538_v24  ;;  %1574 = vst [vmem:[%s3245_s12 + $0x10] sm:$0xff] %v1566_v44  ;;  %vm1520_vm4 = vcmp.gt.f32.partialorder %v1509_v41, 0.0 }
 0x1fc   : > { %v1560_v19 = vsel %vm1520_vm4, 0.0, %v2160_v48  ;;  %vm3551_vm4 = vmand %vm3142_vm13, %vm3550_vm6 }
 0x1fd   : > { %v1568_v34 = vadd.f32 %v1560_v19, %v1552_v35  ;;  %vm1473_vm1 = vmand %vm3551_vm4, %vm2764_vm10 }
 0x1ff   : > { %1576 = vst [vmem:[%s3245_s12 + $0x20] sm:$0xff] %v1568_v34 }
 0x202   : > { %v1035_v58 = vpop.permute.xlu0 %1034 }
 0x203   : > { %v1076_v30 = vadd.f32 %v3209_v42, %v1035_v58 }
 0x205   : > { %v1084_v50 = vsub.f32 %v1076_v30, %v2938_v5 }
 0x206   : > { %v1050_v43 = vpop.permute.xlu0 %1049 }
 0x207   : > { %v1092_v36 = vmax.f32 %v1084_v50, 1e-09  ;;  %v1079_v11 = vadd.f32 %v3209_v42, %v1050_v43 }
 0x209   : > { %2037 = vrcp.f32 %v1092_v36  ;;  %v1220_v61 = vsub.f32 %v1212_v53, %v1092_v36  ;;  %v1087_v13 = vsub.f32 %v1079_v11, %v2977_v3 }
 0x20a   : > { %v1060_v33 = vpop.permute.xlu0 %1059  ;;  %v1501_v27 = vpop.xlane.xlu1 %1500 }
 0x20b   : > { %v1236_v4 = vmul.f32 %v2030_v21, %v1220_v61  ;;  %v1095_v55 = vmax.f32 %v1087_v13, 1e-09  ;;  %v1081_v8 = vadd.f32 %v3209_v42, %v1060_v33  ;;  %vm1516_vm15 = vcmp.gt.f32.partialorder %v1501_v27, 0.0 }
 0x20c   : > { %v1556_v11 = vsel %vm1516_vm15, 0.0, %v2160_v48  ;;  %v1543_v33 = vsel %vm1471_vm2, 0.0, %v2159_v20 }
 0x20d   : > { %2039 = vrcp.f32 %v1095_v55  ;;  %v1223_v28 = vsub.f32 %v1215_v46, %v1095_v55  ;;  %v1089_v59 = vsub.f32 %v1081_v8, %v3101_v37 }
 0x20e   : > { %v1070_v45 = vpop.permute.xlu0 %1069  ;;  %v1507_v19 = vpop.xlane.xlu1 %1506 }
 0x20f   : > { %v1239_v29 = vmul.f32 %v2032_v17, %v1223_v28  ;;  %v1097_v39 = vmax.f32 %v1089_v59, 1e-09  ;;  %v1083_v63 = vadd.f32 %v3209_v42, %v1070_v45  ;;  %vm1519_vm5 = vcmp.gt.f32.partialorder %v1507_v19, 0.0 }
 0x210   : > { %v1545_v59 = vsel %vm1473_vm1, 0.0, %v2159_v20 }
 0x211   : > { %2041 = vrcp.f32 %v1097_v39  ;;  %v1091_v54 = vsub.f32 %v1083_v63, %v3123_v0  ;;  %v1225_v9 = vsub.f32 %v1217_v62, %v1097_v39 }
 0x212   : > { %v1511_v61 = vpop.xlane.xlu1 %1510 }
 0x213   : > { %v1099_v25 = vmax.f32 %v1091_v54, 1e-09  ;;  %v1241_v38 = vmul.f32 %v2034_v32, %v1225_v9  ;;  %vm1521_vm11 = vcmp.gt.f32.partialorder %v1511_v61, 0.0 }
 0x215   : > { %2043 = vrcp.f32 %v1099_v25  ;;  %v1227_v16 = vsub.f32 %v1219_v60, %v1099_v25 }
 0x216   : > { %v2038_v26 = vpop.eup %2037  ;;  %v1515_v28 = vpop.xlane.xlu1 %1514 }
 0x217   : > { %v1108_v2 = vmul.f32 %v2038_v26, %v1092_v36  ;;  %v3305_v14 = vmul.f32 %v2036_v18, %v1227_v16 }
 0x219   : > { %v1116_v49 = vsub.f32 2.0, %v1108_v2 }
 0x21a   : > { %v2040_v52 = vpop.eup %2039 }
 0x21b   : > { %v1124_v35 = vmul.f32 %v2038_v26, %v1116_v49  ;;  %v1111_v42 = vmul.f32 %v2040_v52, %v1095_v55 }
 0x21d   : > { %v1132_v15 = vmul.f32 %v1124_v35, %v2938_v5  ;;  %v1119_v24 = vsub.f32 2.0, %v1111_v42 }
 0x21e   : > { %v2042_v53 = vpop.eup %2041 }
 0x21f   : > { %v1244_v44 = vsub.f32 %v1132_v15, %v1236_v4  ;;  %1580 = vst [vmem:[%s3232_s11] sm:$0xff] %v1132_v15  ;;  %v1127_v23 = vmul.f32 %v2040_v52, %v1119_v24  ;;  %v1113_v41 = vmul.f32 %v2042_v53, %v1097_v39  ;;  %v672_v4 = vpop.f32.mrf.mxu1 }
 0x221   : > { %v1135_v46 = vmul.f32 %v1127_v23, %v2977_v3  ;;  %v1121_v34 = vsub.f32 2.0, %v1113_v41  ;;  %v1524_v62 = vmul.f32 3.0, %v1244_v44 }
 0x222   : > { %v2044_v5 = vpop.eup %2043 }
 0x223   : > { %v1247_v58 = vsub.f32 %v1135_v46, %v1239_v29  ;;  %1583 = vst [vmem:[%s3232_s11 + $0x18] sm:$0xff] %v1135_v46  ;;  %v1532_v30 = vsub.f32 %v3226_v1, %v1524_v62  ;;  %v1115_v60 = vmul.f32 %v2044_v5, %v1099_v25  ;;  %v1129_v50 = vmul.f32 %v2042_v53, %v1121_v34 }
 0x225   : > { %v1548_v3 = vadd.f32 %v1540_v47, %v1532_v30  ;;  %v1123_v43 = vsub.f32 2.0, %v1115_v60  ;;  %v1527_v36 = vmul.f32 3.0, %v1247_v58  ;;  %v1137_v1 = vmul.f32 %v1129_v50, %v3101_v37 }
 0x227   : > { %v1564_v13 = vadd.f32 %v1556_v11, %v1548_v3  ;;  %v1535_v40 = vsub.f32 %v3229_v31, %v1527_v36  ;;  %v1131_v21 = vmul.f32 %v2044_v5, %v1123_v43  ;;  %v1249_v12 = vsub.f32 %v1137_v1, %v1241_v38  ;;  %1585 = vst [vmem:[%s3232_s11 + $0x28] sm:$0xff] %v1137_v1 }
 0x229   : > { %1572 = vst [vmem:[%s3245_s12] sm:$0xff] %v1564_v13  ;;  %v1551_v37 = vadd.f32 %v1543_v33, %v1535_v40  ;;  %v1139_v55 = vmul.f32 %v1131_v21, %v3123_v0  ;;  %v1529_v31 = vmul.f32 3.0, %v1249_v12  ;;  %v1559_v0 = vsel %vm1519_vm5, 0.0, %v2160_v48 }
 0x22b   : > { %v1567_v56 = vadd.f32 %v1559_v0, %v1551_v37  ;;  %v1251_v7 = vsub.f32 %v1139_v55, %v3305_v14  ;;  %1587 = vst [vmem:[%s3232_s11 + $0x38] sm:$0xff] %v1139_v55  ;;  %v1537_v8 = vsub.f32 %v672_v4, %v1529_v31 }
 0x22c   : > { %2058 = shalt.err (!%p2055_p5)
}
 0x22d   : > { %s2059_s9 = scalar_lea.hbm %s3350_s17, 1024  ;;  %s2063_s15 = scalar_lea.hbm %s3464_s5, 2048 }
 0x22e   : > { %p2060_p6 = scmp.ne.s32.totalorder %s3350_s17, %s2059_s9  ;;  %p2064_p10 = scmp.lt.s32.totalorder %s3350_s17, %s3464_s5 }
 0x22f   : > { %p2065_p11 = scmp.lt.s32.totalorder %s2063_s15, %s2059_s9 }
 0x230   : > { %p2061_p7 = pnand %p2060_p6, %p2235_p4 }
 0x231   : > { %p2066_p12 = por %p2065_p11, %p2064_p10 }
 0x232   : > { %p2062_p9 = pneg %p2061_p7 }
 0x234   : > { %p2067_p13 = pnand %p2066_p12, %p2062_p9 }
 0x236   : > { %2070 = shalt.err (!%p2067_p13)
}
 0x237   : > { %s2162_s25 = smov 128   ;;  %s2163_s29 = smov 8   ;;  %1575 = vst [vmem:[%s3245_s12 + $0x18] sm:$0xff] %v1567_v56  ;;  %vm1475_vm13 = vmand %vm1461_vm12, %vm2764_vm10  ;;  %v1531_v17 = vmul.f32 3.0, %v1251_v7  ;;  %v1553_v45 = vadd.f32 %v1545_v59, %v1537_v8  ;;  %v1561_v29 = vsel %vm1521_vm11, 0.0, %v2160_v48  ;;  %vm1523_vm3 = vcmp.gt.f32.partialorder %v1515_v28, 0.0 }
 0x238   : > { %1890 = dma.vmem_to_hbm [thread:$0]  (%p2235_p4), %s3352_s14, 1024, %s3350_s17, %s1594_s24, %s2162_s25, %s2162_s25, %s2163_s29   ;;  %v1547_v6 = vsel %vm1475_vm13, 0.0, %v2159_v20  ;;  %v1563_v22 = vsel %vm1523_vm3, 0.0, %v2160_v48 }
 0x239   : > { %v1539_v39 = vsub.f32 %v3320_v51, %v1531_v17  ;;  %v1569_v63 = vadd.f32 %v1561_v29, %v1553_v45  ;;  %s1609_s14 = sshll.u32 %s3245_s12, 4  ;;  %s3408_s8 = scalar_lea.hbm %s3463_s4, %s1835_s13  ;;  %s3410_s14 = int_to_ptr.vmem [resolvable:$true] %s1609_s14 }
 0x23a   : > { %s1589_s9 = scalar_lea.sflag [#allocation3], %s3224_s7  ;;  %s2071_s10 = scalar_lea.vmem %s3410_s14, 1024 }
 0x23b   : > { %v1555_v54 = vadd.f32 %v1547_v6, %v1539_v39  ;;  %1577 = vst [vmem:[%s3245_s12 + $0x28] sm:$0xff] %v1569_v63  ;;  %v1513_v9 = vpop.xlane.xlu0 %1512  ;;  %p2072_p0 = scmp.ne.s32.totalorder %s3410_s14, %s2071_s10  ;;  %s2164_s11 = smov [#allocation2]  }
 0x23c   : > { %vm1522_vm10 = vcmp.gt.f32.partialorder %v1513_v9, 0.0  ;;  %s2075_s15 = sshll.u32 %s2164_s11, 4  ;;  %s2076_s15 = int_to_ptr.vmem [resolvable:$false] %s2075_s15 }
 0x23d   : > { %v1571_v57 = vadd.f32 %v1563_v22, %v1555_v54  ;;  %v1562_v32 = vsel %vm1522_vm10, 0.0, %v2160_v48  ;;  %p2073_p1 = pnand %p2072_p0, %p2235_p4  ;;  %s2077_s21 = scalar_lea.vmem %s2076_s15, 2048 }
 0x23e   : > { %v1570_v25 = vadd.f32 %v1562_v32, %v3289_v10  ;;  %p2078_p3 = scmp.lt.s32.totalorder %s3410_s14, %s2076_s15  ;;  %p2079_p5 = scmp.lt.s32.totalorder %s2077_s21, %s2071_s10 }
 0x23f   : > { %1579 = vst [vmem:[%s3245_s12 + $0x38] sm:$0xff] %v1571_v57  ;;  %p2074_p2 = pneg %p2073_p1 }
 0x240   : > { %1578 = vst [vmem:[%s3245_s12 + $0x30] sm:$0xff] %v1570_v25  ;;  %p2080_p6 = por %p2079_p5, %p2078_p3 }
 0x242   : > { %p2081_p7 = pnand %p2080_p6, %p2074_p2 }
 0x244   : > { %2084 = shalt.err (!%p2081_p7)
}
 0x245   : > { %s2085_s12 = scalar_lea.hbm %s3408_s8, 1024  ;;  %s2089_s16 = scalar_lea.hbm %s3463_s4, 2048 }
 0x246   : > { %p2086_p9 = scmp.ne.s32.totalorder %s3408_s8, %s2085_s12  ;;  %p2090_p12 = scmp.lt.s32.totalorder %s3408_s8, %s3463_s4 }
 0x247   : > { %p2091_p13 = scmp.lt.s32.totalorder %s2089_s16, %s2085_s12 }
 0x248   : > { %p2087_p10 = pnand %p2086_p9, %p2235_p4 }
 0x249   : > { %p2092_p0 = por %p2091_p13, %p2090_p12 }
 0x24a   : > { %p2088_p11 = pneg %p2087_p10 }
 0x24c   : > { %p2093_p1 = pnand %p2092_p0, %p2088_p11 }
 0x24e   : > { %2096 = shalt.err (!%p2093_p1)
}
 0x24f   : > { %1889 = dma.vmem_to_hbm [thread:$0]  (%p2235_p4), %s3410_s14, 1024, %s3408_s8, %s1589_s9, %s2162_s25, %s2162_s25, %s2163_s29  }
 0x250 PF: > { %p1900_p2 = scmp.ge.s32.totalorder %s2151_s23, 2  ;;  %s1642_s24 = sand.u32 1, %s2131_s18  }
 0x251   : > { %s1643_s10 = scalar_lea.sflag [#allocation3], %s1642_s24 }
 0x252   : > { %p1894_p3 = pnand %p1900_p2, %p2242_p8 }
 0x254   : > { %p1895_p5 = pneg %p1894_p3 }
 0x256   : > { %2122 = dma.done.wait (%p1895_p5), %s1643_s10, 1024  }
 0x257   : > { %2124 = vsyncadd (%p1895_p5), %s1643_s10, 4294966272  ;;  %s1652_s11 = scalar_lea.sflag [#allocation5], %s1642_s24 }
 0x258   : > { %2126 = dma.done.wait (%p1895_p5), %s1652_s11, 1024  }
 0x259   : > { %2128 = vsyncadd (%p1895_p5), %s1652_s11, 4294966272  ;;  %s22_s23 = sadd.s32 1, %s2151_s23   ;;  %s3552_s18 = smov %s2135_s19 }
 0x25a   : > { %p19_p6 = scmp.ge.s32.totalorder %s22_s23, 4   ;;  %s3553_s19 = smov %s2139_s20 }
 0x25b   : > { %s3554_s20 = smov %s2248_s6  ;;  %s3555_s21 = smov %s2147_s22 }
 0x25c   : > { %s3556_s22 = smov %s3558_s26  ;;  %21 = sbr.rel (!%p19_p6) target bundleno = 6 (0x6), region = 97 }
 0x261   :  { %1657 = vsyncpa [#allocation3], 1 }
 0x262   :  { %1659 = vsyncpa [#allocation3 + $0x1], 1 }
 0x263   :  { %1660 = vsyncpa [#allocation5], 1 }
 0x264   :  { %1662 = vsyncpa [#allocation5 + $0x1], 1 }

</bundles_post_ra>
